<compile_context>
chip_gen: v5e
topology: v5e:2x2
jax: 0.10.0
libtpu: 0.0.40
codegen_flags: <defaults>
</compile_context>

<pallas_src>
import math

import jax
import jax.numpy as jnp
from jax.experimental import pallas as pl
from jax.experimental.pallas import tpu as pltpu

H = 4          # number of attention heads
D_MODEL = 32   # model width
D_FF = 64      # feed-forward hidden width
DK = D_MODEL // H
EPS = 1e-6
NEG_INF = -1e9

# Operand dtype at every dot site (accumulation stays f32 via
# preferred_element_type).  Flip to jnp.bfloat16 on v6e/v7x in production
# (keep LN / softmax / mask math in f32 either way, per review).
MATMUL_DTYPE = jnp.float32

# vec slab row layout: every vector sits in its own sublane row at lane offset 0
ROW_LN1_G, ROW_LN1_B, ROW_BO1 = 0, 1, 2
ROW_LN2_G, ROW_LN2_B, ROW_BO2 = 3, 4, 5
ROW_LN3_G, ROW_LN3_B = 6, 7
ROW_B2, ROW_B1 = 8, 9
VEC_ROWS = 10


# ----------------------------- kernel helpers (traced inside the kernel) ---

def _dot(a, b):
    return jnp.dot(a.astype(MATMUL_DTYPE), b.astype(MATMUL_DTYPE),
                   preferred_element_type=jnp.float32)


def _layer_norm(v, g, b):
    mu = jnp.mean(v, axis=-1, keepdims=True)
    var = jnp.mean((v - mu) ** 2, axis=-1, keepdims=True)
    return (v - mu) * jax.lax.rsqrt(var + EPS) * g + b


# ---------------------------------------------------------------- kernel ---

def _make_kernel(sq, skv_pad, skv):
    """Kernel body for ONE batch element (grid axis = batch, 'parallel')."""

    def kernel(x_ref, mem_ref, mask_ref, wqkv_ref, bqkv_ref, wo_ref,
               wffn_ref, vec_ref, out_ref):
        x = x_ref[0]          # (sq, D)
        mem = mem_ref[0]      # (skv_pad, D)
        mask = mask_ref[0]    # (sq, sq), 0/1

        def vrow(i, width=D_MODEL):
            return vec_ref[i:i + 1, 0:width]          # (1, width), lane 0

        # Additive biases built ONCE per grid step (no per-head/per-batch tiling).
        self_bias = jnp.where(mask > 0, 0.0, NEG_INF)               # (sq, sq)
        if skv_pad != skv:
            col = jax.lax.broadcasted_iota(jnp.int32, (1, skv_pad), 1)
            cross_bias = jnp.where(col < skv, 0.0, NEG_INF)         # (1, skv_pad)
        else:
            cross_bias = None

        def mha(xq, xkv, sl, bias):
            # Heads = H independent tiny matmul chains; per-head weights come
            # from leading-axis slab indices (free).  No lane slices / concats /
            # transposes anywhere in the attention path (review item 1).
            acc = None
            for h in range(H):
                iq = sl * 3 * H + 0 * H + h
                ik = sl * 3 * H + 1 * H + h
                iv = sl * 3 * H + 2 * H + h
                q = _dot(xq, wqkv_ref[iq]) + bqkv_ref[iq]   # (sq, dk); Wq pre-scaled
                k = _dot(xkv, wqkv_ref[ik]) + bqkv_ref[ik]  # (skv, dk)
                v = _dot(xkv, wqkv_ref[iv]) + bqkv_ref[iv]  # (skv, dk)
                s = jax.lax.dot_general(
                    q.astype(MATMUL_DTYPE), k.astype(MATMUL_DTYPE),
                    (((1,), (1,)), ((), ())),
                    preferred_element_type=jnp.float32)     # (sq, skv)
                if bias is not None:
                    s = s + bias
                s = s - jnp.max(s, axis=-1, keepdims=True)
                p = jnp.exp(s)
                p = p * pl.reciprocal(jnp.sum(p, axis=-1, keepdims=True),
                                      approx=True)          # EUP slot, off VALU path
                o = _dot(p, v)                              # (sq, dk)
                c = _dot(o, wo_ref[sl * H + h])             # (sq, D)
                acc = c if acc is None else acc + c
            return acc

        # --- sublayer 1: pre-norm masked self-attention + residual ---
        xn = _layer_norm(x, vrow(ROW_LN1_G), vrow(ROW_LN1_B))
        y1 = x + mha(xn, xn, 0, self_bias) + vrow(ROW_BO1)

        # --- sublayer 2: pre-norm cross-attention over encoder memory ---
        y1n = _layer_norm(y1, vrow(ROW_LN2_G), vrow(ROW_LN2_B))
        y2 = y1 + mha(y1n, mem, 1, cross_bias) + vrow(ROW_BO2)

        # --- sublayer 3: pre-norm position-wise feed-forward ---
        y2n = _layer_norm(y2, vrow(ROW_LN3_G), vrow(ROW_LN3_B))
        w1 = wffn_ref[0:D_MODEL, :]                          # (D, D_FF), lane 0
        w2 = wffn_ref[D_MODEL:D_MODEL + D_FF, 0:D_MODEL]     # (D_FF, D), lane 0
        hidden = jnp.maximum(_dot(y2n, w1) + vrow(ROW_B1, D_FF), 0.0)
        ff = _dot(hidden, w2) + vrow(ROW_B2)

        out_ref[0] = (y2 + ff).astype(out_ref.dtype)

    return kernel


# --------------------------------------------------------------- wrapper ---

def _pack_params(params):
    (ln1_g, ln1_b, wq1, bq1, wk1, bk1, wv1, bv1, wo1, bo1,
     ln2_g, ln2_b, wq2, bq2, wk2, bk2, wv2, bv2, wo2, bo2,
     ln3_g, ln3_b, w1, b1, w2, b2) = params

    scale = 1.0 / math.sqrt(DK)   # fold 1/sqrt(dk) into Wq/bq (free, wrapper-side)

    def cols(w):    # (D, D) -> (H, D, dk): per-head column blocks
        return jnp.stack([w[:, h * DK:(h + 1) * DK] for h in range(H)], axis=0)

    def colsb(b):   # (1, D) -> (H, 1, dk)
        return jnp.stack([b[:, h * DK:(h + 1) * DK] for h in range(H)], axis=0)

    def rows(w):    # (D, D) -> (H, dk, D): per-head row blocks (Wo)
        return jnp.stack([w[h * DK:(h + 1) * DK, :] for h in range(H)], axis=0)

    # index = sl*3*H + t*H + h   (t: 0=q, 1=k, 2=v)
    w_qkv = jnp.concatenate([cols(wq1 * scale), cols(wk1), cols(wv1),
                             cols(wq2 * scale), cols(wk2), cols(wv2)], axis=0)
    b_qkv = jnp.concatenate([colsb(bq1 * scale), colsb(bk1), colsb(bv1),
                             colsb(bq2 * scale), colsb(bk2), colsb(bv2)], axis=0)
    w_o = jnp.concatenate([rows(wo1), rows(wo2)], axis=0)          # (2*H, dk, D)

    # FFN slab: W1 in rows 0:D (all lanes), W2 in rows D:D+D_FF at lanes 0:D.
    w_ffn = jnp.zeros((D_MODEL + D_FF, D_FF), jnp.float32)
    w_ffn = w_ffn.at[:D_MODEL, :].set(w1)
    w_ffn = w_ffn.at[D_MODEL:, :D_MODEL].set(w2)

    def row(v):     # pad each bias/LN vector to D_FF lanes, one sublane row each
        return jnp.pad(v, ((0, 0), (0, D_FF - v.shape[1])))

    vec = jnp.concatenate(
        [row(v) for v in (ln1_g, ln1_b, bo1, ln2_g, ln2_b, bo2,
                          ln3_g, ln3_b, b2, b1)], axis=0)          # (VEC_ROWS, D_FF)
    return w_qkv, b_qkv, w_o, w_ffn, vec


def decoder_layer(x, memory, mask, params):
    B, S, D = x.shape
    Sm = memory.shape[1]
    S_pad = ((S + 7) // 8) * 8
    Sm_pad = ((Sm + 7) // 8) * 8

    if S_pad != S:   # keep every in-kernel tile 8-sublane aligned
        x = jnp.pad(x, ((0, 0), (0, S_pad - S), (0, 0)))
        mask = jnp.pad(mask, ((0, 0), (0, S_pad - S), (0, S_pad - S)))
    if Sm_pad != Sm:
        memory = jnp.pad(memory, ((0, 0), (0, Sm_pad - Sm), (0, 0)))
    mask = mask.astype(jnp.float32)

    w_qkv, b_qkv, w_o, w_ffn, vec = _pack_params(params)

    const3 = lambda b: (0, 0, 0)
    const2 = lambda b: (0, 0)
    out = pl.pallas_call(
        _make_kernel(S_pad, Sm_pad, Sm),
        out_shape=jax.ShapeDtypeStruct((B, S_pad, D), x.dtype),
        grid=(B,),
        in_specs=[
            pl.BlockSpec((1, S_pad, D), lambda b: (b, 0, 0)),      # x block
            pl.BlockSpec((1, Sm_pad, D), lambda b: (b, 0, 0)),     # memory block
            pl.BlockSpec((1, S_pad, S_pad), lambda b: (b, 0, 0)),  # 0/1 mask block
            pl.BlockSpec(w_qkv.shape, const3),                     # per-head Wq/Wk/Wv
            pl.BlockSpec(b_qkv.shape, const3),                     # per-head bq/bk/bv
            pl.BlockSpec(w_o.shape, const3),                       # per-head Wo rows
            pl.BlockSpec(w_ffn.shape, const2),                     # W1 | W2 slab
            pl.BlockSpec(vec.shape, const2),                       # LN / bias rows
        ],
        out_specs=pl.BlockSpec((1, S_pad, D), lambda b: (b, 0, 0)),
        compiler_params=pltpu.CompilerParams(
            dimension_semantics=("parallel",)),    # both TensorCores on v7x
    )(x, memory, mask, w_qkv, b_qkv, w_o, w_ffn, vec)
    return out[:, :S, :]


# ------------------------------------------------ parameter construction ---

def init_params(key, d_model, d_ff):
    keys = iter(jax.random.split(key, 64))

    def lin(din, dout):
        w = jax.random.normal(next(keys), (din, dout), jnp.float32) / math.sqrt(din)
        b = 0.02 * jax.random.normal(next(keys), (1, dout), jnp.float32)
        return w, b

    def ln():
        g = 1.0 + 0.1 * jax.random.normal(next(keys), (1, d_model), jnp.float32)
        b = 0.1 * jax.random.normal(next(keys), (1, d_model), jnp.float32)
        return g, b

    params = []
    # sublayer 1: LN + self-attn (Wq, Wk, Wv, Wo)
    params += list(ln())
    for _ in range(4):
        params += list(lin(d_model, d_model))
    # sublayer 2: LN + cross-attn (Wq, Wk, Wv, Wo)
    params += list(ln())
    for _ in range(4):
        params += list(lin(d_model, d_model))
    # sublayer 3: LN + FFN
    params += list(ln())
    params += list(lin(d_model, d_ff))
    params += list(lin(d_ff, d_model))
    return params


# ------------------------------------------------------ pure-JAX reference -

def ref_forward(x, mem, mask, params):
    (ln1_g, ln1_b, wq1, bq1, wk1, bk1, wv1, bv1, wo1, bo1,
     ln2_g, ln2_b, wq2, bq2, wk2, bk2, wv2, bv2, wo2, bo2,
     ln3_g, ln3_b, w1, b1, w2, b2) = params

    def ln(v, g, b):
        mu = jnp.mean(v, -1, keepdims=True)
        var = jnp.mean((v - mu) ** 2, -1, keepdims=True)
        return (v - mu) * jax.lax.rsqrt(var + EPS) * g + b

    def mha(xq, xkv, wq, bq, wk, bk, wv, bv, wo, bo, m):
        B, Sq, D = xq.shape
        Sk = xkv.shape[1]
        dk = D // H
        q = (xq @ wq + bq).reshape(B, Sq, H, dk).transpose(0, 2, 1, 3)
        k = (xkv @ wk + bk).reshape(B, Sk, H, dk).transpose(0, 2, 1, 3)
        v = (xkv @ wv + bv).reshape(B, Sk, H, dk).transpose(0, 2, 1, 3)
        s = q @ k.transpose(0, 1, 3, 2) / math.sqrt(dk)
        if m is not None:
            s = jnp.where(m[:, None, :, :] > 0, s, NEG_INF)
        p = jax.nn.softmax(s, axis=-1)
        o = (p @ v).transpose(0, 2, 1, 3).reshape(B, Sq, D)
        return o @ wo + bo

    y1 = x + mha(ln(x, ln1_g, ln1_b), ln(x, ln1_g, ln1_b),
                 wq1, bq1, wk1, bk1, wv1, bv1, wo1, bo1, mask)
    y2 = y1 + mha(ln(y1, ln2_g, ln2_b), mem,
                  wq2, bq2, wk2, bk2, wv2, bv2, wo2, bo2, None)
    y2n = ln(y2, ln3_g, ln3_b)
    ff = jnp.maximum(y2n @ w1 + b1, 0.0) @ w2 + b2
    return y2 + ff


# ------------------------------------------------------------------- main --

if __name__ == "__main__":
    B, S, S_MEM = 2, 8, 10

    key = jax.random.PRNGKey(0)
    kx, kmem, kp = jax.random.split(key, 3)

    x = jax.random.normal(kx, (B, S, D_MODEL), jnp.float32)
    memory = jax.random.normal(kmem, (B, S_MEM, D_MODEL), jnp.float32)
    # causal (subsequent) decoder mask, broadcast to each batch element
    mask = jnp.tril(jnp.ones((S, S), jnp.float32))[None].repeat(B, axis=0)

    params = init_params(kp, D_MODEL, D_FF)

    out = jax.block_until_ready(decoder_layer(x, memory, mask, params))

    ref = ref_forward(x, memory, mask, params)
    assert out.shape == (B, S, D_MODEL)
    # 5e-3 slack solely covers the EUP approximate reciprocal in the softmax
    # (review item); approx=False restores ~1e-5-level parity with the reference.
    assert jnp.allclose(out, ref, atol=5e-3, rtol=5e-3), "mismatch vs reference"

    print("KERNEL_OK")
</pallas_src>

<mosaic_0001>
module attributes {stable_mosaic.version = 11 : i64} {
  func.func @kernel(%arg0: i32, %arg1: memref<1x8x32xf32, #tpu.memory_space<vmem>>, %arg2: memref<1x16x32xf32, #tpu.memory_space<vmem>>, %arg3: memref<1x8x8xf32, #tpu.memory_space<vmem>>, %arg4: memref<24x32x8xf32, #tpu.memory_space<vmem>>, %arg5: memref<24x1x8xf32, #tpu.memory_space<vmem>>, %arg6: memref<8x8x32xf32, #tpu.memory_space<vmem>>, %arg7: memref<96x64xf32, #tpu.memory_space<vmem>>, %arg8: memref<10x64xf32, #tpu.memory_space<vmem>>, %arg9: memref<1x8x32xf32, #tpu.memory_space<vmem>>) attributes {dimension_semantics = [#tpu.dimension_semantics<parallel>], iteration_bounds = array<i64: 2>, scalar_prefetch = 0 : i64, scratch_operands = 0 : i64, tpu.core_type = #tpu.core_type<tc>, window_params = [{transform_indices = @transform_0, window_bounds = array<i64: 1, 8, 32>}, {transform_indices = @transform_1, window_bounds = array<i64: 1, 16, 32>}, {transform_indices = @transform_2, window_bounds = array<i64: 1, 8, 8>}, {pipeline_mode = #tpu.pipeline_mode<synchronous>, transform_indices = @transform_3, window_bounds = array<i64: 24, 32, 8>}, {pipeline_mode = #tpu.pipeline_mode<synchronous>, transform_indices = @transform_4, window_bounds = array<i64: 24, 1, 8>}, {pipeline_mode = #tpu.pipeline_mode<synchronous>, transform_indices = @transform_5, window_bounds = array<i64: 8, 8, 32>}, {pipeline_mode = #tpu.pipeline_mode<synchronous>, transform_indices = @transform_6, window_bounds = array<i64: 96, 64>}, {pipeline_mode = #tpu.pipeline_mode<synchronous>, transform_indices = @transform_7, window_bounds = array<i64: 10, 64>}, {transform_indices = @transform_8, window_bounds = array<i64: 1, 8, 32>}]} {
    %c0 = arith.constant 0 : index
    %c0_0 = arith.constant 0 : index
    %c0_1 = arith.constant 0 : index
    %0 = vector.load %arg1[%c0, %c0_0, %c0_1] : memref<1x8x32xf32, #tpu.memory_space<vmem>>, vector<1x8x32xf32>
    %1 = vector.shape_cast %0 : vector<1x8x32xf32> to vector<8x32xf32>
    %c0_2 = arith.constant 0 : index
    %c0_3 = arith.constant 0 : index
    %c0_4 = arith.constant 0 : index
    %2 = vector.load %arg2[%c0_2, %c0_3, %c0_4] : memref<1x16x32xf32, #tpu.memory_space<vmem>>, vector<1x16x32xf32>
    %3 = vector.shape_cast %2 : vector<1x16x32xf32> to vector<16x32xf32>
    %c0_5 = arith.constant 0 : index
    %c0_6 = arith.constant 0 : index
    %c0_7 = arith.constant 0 : index
    %4 = vector.load %arg3[%c0_5, %c0_6, %c0_7] : memref<1x8x8xf32, #tpu.memory_space<vmem>>, vector<1x8x8xf32>
    %5 = vector.shape_cast %4 : vector<1x8x8xf32> to vector<8x8xf32>
    %cst = arith.constant 0.000000e+00 : f32
    %6 = vector.broadcast %cst : f32 to vector<8x8xf32>
    %7 = arith.cmpf ogt, %5, %6 : vector<8x8xf32>
    %cst_8 = arith.constant 0.000000e+00 : f32
    %cst_9 = arith.constant -1.000000e+09 : f32
    %8 = vector.broadcast %cst_8 : f32 to vector<8x8xf32>
    %9 = vector.broadcast %cst_9 : f32 to vector<8x8xf32>
    %10 = arith.select %7, %8, %9 : vector<8x8xi1>, vector<8x8xf32>
    %11 = tpu.iota {dimensions = array<i32: 1>} : vector<1x16xi32>
    %c10_i32 = arith.constant 10 : i32
    %12 = vector.broadcast %c10_i32 : i32 to vector<1x16xi32>
    %13 = arith.cmpi slt, %11, %12 : vector<1x16xi32>
    %cst_10 = arith.constant 0.000000e+00 : f32
    %cst_11 = arith.constant -1.000000e+09 : f32
    %14 = vector.broadcast %cst_10 : f32 to vector<1x16xf32>
    %15 = vector.broadcast %cst_11 : f32 to vector<1x16xf32>
    %16 = arith.select %13, %14, %15 : vector<1x16xi1>, vector<1x16xf32>
    %c0_12 = arith.constant 0 : index
    %c0_13 = arith.constant 0 : index
    %17 = vector.load %arg8[%c0_12, %c0_13] : memref<10x64xf32, #tpu.memory_space<vmem>>, vector<1x32xf32>
    %c1 = arith.constant 1 : index
    %c0_14 = arith.constant 0 : index
    %18 = vector.load %arg8[%c1, %c0_14] : memref<10x64xf32, #tpu.memory_space<vmem>>, vector<1x32xf32>
    %cst_15 = arith.constant dense<0.000000e+00> : vector<8xf32>
    %19 = vector.multi_reduction <add>, %1, %cst_15 [1] : vector<8x32xf32> to vector<8xf32>
    %20 = vector.shape_cast %19 : vector<8xf32> to vector<8x1xf32>
    %cst_16 = arith.constant 3.200000e+01 : f32
    %21 = vector.broadcast %cst_16 : f32 to vector<8x1xf32>
    %22 = arith.divf %20, %21 : vector<8x1xf32>
    %23 = vector.broadcast %22 : vector<8x1xf32> to vector<8x32xf32>
    %24 = arith.subf %1, %23 : vector<8x32xf32>
    %25 = arith.mulf %24, %24 : vector<8x32xf32>
    %cst_17 = arith.constant dense<0.000000e+00> : vector<8xf32>
    %26 = vector.multi_reduction <add>, %25, %cst_17 [1] : vector<8x32xf32> to vector<8xf32>
    %27 = vector.shape_cast %26 : vector<8xf32> to vector<8x1xf32>
    %cst_18 = arith.constant 3.200000e+01 : f32
    %28 = vector.broadcast %cst_18 : f32 to vector<8x1xf32>
    %29 = arith.divf %27, %28 : vector<8x1xf32>
    %30 = vector.broadcast %22 : vector<8x1xf32> to vector<8x32xf32>
    %31 = arith.subf %1, %30 : vector<8x32xf32>
    %cst_19 = arith.constant 9.99999997E-7 : f32
    %32 = vector.broadcast %cst_19 : f32 to vector<8x1xf32>
    %33 = arith.addf %29, %32 : vector<8x1xf32>
    %34 = math.rsqrt %33 : vector<8x1xf32>
    %35 = vector.broadcast %34 : vector<8x1xf32> to vector<8x32xf32>
    %36 = arith.mulf %31, %35 : vector<8x32xf32>
    %37 = vector.broadcast %17 : vector<1x32xf32> to vector<8x32xf32>
    %38 = arith.mulf %36, %37 : vector<8x32xf32>
    %39 = vector.broadcast %18 : vector<1x32xf32> to vector<8x32xf32>
    %40 = arith.addf %38, %39 : vector<8x32xf32>
    %c0_20 = arith.constant 0 : index
    %c0_21 = arith.constant 0 : index
    %c0_22 = arith.constant 0 : index
    %41 = vector.load %arg4[%c0_20, %c0_21, %c0_22] : memref<24x32x8xf32, #tpu.memory_space<vmem>>, vector<1x32x8xf32>
    %42 = vector.shape_cast %41 : vector<1x32x8xf32> to vector<32x8xf32>
    %cst_23 = arith.constant dense<0.000000e+00> : vector<8x8xf32>
    %43 = tpu.matmul %40, %42, %cst_23 {dimension_numbers = #tpu.dot_dimension_numbers<[1], [0], [0], [1], [0, 0, 1, 1], [], []>} : vector<8x32xf32>, vector<32x8xf32>, vector<8x8xf32> -> vector<8x8xf32>
    %c0_24 = arith.constant 0 : index
    %c0_25 = arith.constant 0 : index
    %c0_26 = arith.constant 0 : index
    %44 = vector.load %arg5[%c0_24, %c0_25, %c0_26] : memref<24x1x8xf32, #tpu.memory_space<vmem>>, vector<1x1x8xf32>
    %45 = vector.shape_cast %44 : vector<1x1x8xf32> to vector<1x8xf32>
    %46 = vector.broadcast %45 : vector<1x8xf32> to vector<8x8xf32>
    %47 = arith.addf %43, %46 : vector<8x8xf32>
    %c4 = arith.constant 4 : index
    %c0_27 = arith.constant 0 : index
    %c0_28 = arith.constant 0 : index
    %48 = vector.load %arg4[%c4, %c0_27, %c0_28] : memref<24x32x8xf32, #tpu.memory_space<vmem>>, vector<1x32x8xf32>
    %49 = vector.shape_cast %48 : vector<1x32x8xf32> to vector<32x8xf32>
    %cst_29 = arith.constant dense<0.000000e+00> : vector<8x8xf32>
    %50 = tpu.matmul %40, %49, %cst_29 {dimension_numbers = #tpu.dot_dimension_numbers<[1], [0], [0], [1], [0, 0, 1, 1], [], []>} : vector<8x32xf32>, vector<32x8xf32>, vector<8x8xf32> -> vector<8x8xf32>
    %c4_30 = arith.constant 4 : index
    %c0_31 = arith.constant 0 : index
    %c0_32 = arith.constant 0 : index
    %51 = vector.load %arg5[%c4_30, %c0_31, %c0_32] : memref<24x1x8xf32, #tpu.memory_space<vmem>>, vector<1x1x8xf32>
    %52 = vector.shape_cast %51 : vector<1x1x8xf32> to vector<1x8xf32>
    %53 = vector.broadcast %52 : vector<1x8xf32> to vector<8x8xf32>
    %54 = arith.addf %50, %53 : vector<8x8xf32>
    %c8 = arith.constant 8 : index
    %c0_33 = arith.constant 0 : index
    %c0_34 = arith.constant 0 : index
    %55 = vector.load %arg4[%c8, %c0_33, %c0_34] : memref<24x32x8xf32, #tpu.memory_space<vmem>>, vector<1x32x8xf32>
    %56 = vector.shape_cast %55 : vector<1x32x8xf32> to vector<32x8xf32>
    %cst_35 = arith.constant dense<0.000000e+00> : vector<8x8xf32>
    %57 = tpu.matmul %40, %56, %cst_35 {dimension_numbers = #tpu.dot_dimension_numbers<[1], [0], [0], [1], [0, 0, 1, 1], [], []>} : vector<8x32xf32>, vector<32x8xf32>, vector<8x8xf32> -> vector<8x8xf32>
    %c8_36 = arith.constant 8 : index
    %c0_37 = arith.constant 0 : index
    %c0_38 = arith.constant 0 : index
    %58 = vector.load %arg5[%c8_36, %c0_37, %c0_38] : memref<24x1x8xf32, #tpu.memory_space<vmem>>, vector<1x1x8xf32>
    %59 = vector.shape_cast %58 : vector<1x1x8xf32> to vector<1x8xf32>
    %60 = vector.broadcast %59 : vector<1x8xf32> to vector<8x8xf32>
    %61 = arith.addf %57, %60 : vector<8x8xf32>
    %cst_39 = arith.constant dense<0.000000e+00> : vector<8x8xf32>
    %62 = tpu.matmul %47, %54, %cst_39 {dimension_numbers = #tpu.dot_dimension_numbers<[1], [1], [0], [0], [0, 0, 1, 0], [], []>} : vector<8x8xf32>, vector<8x8xf32>, vector<8x8xf32> -> vector<8x8xf32>
    %63 = arith.addf %62, %10 : vector<8x8xf32>
    %cst_40 = arith.constant dense<0xFF800000> : vector<8xf32>
    %64 = vector.multi_reduction <maximumf>, %63, %cst_40 [1] : vector<8x8xf32> to vector<8xf32>
    %65 = vector.shape_cast %64 : vector<8xf32> to vector<8x1xf32>
    %66 = vector.broadcast %65 : vector<8x1xf32> to vector<8x8xf32>
    %67 = arith.subf %63, %66 : vector<8x8xf32>
    %68 = math.exp %67 : vector<8x8xf32>
    %cst_41 = arith.constant dense<0.000000e+00> : vector<8xf32>
    %69 = vector.multi_reduction <add>, %68, %cst_41 [1] : vector<8x8xf32> to vector<8xf32>
    %70 = vector.shape_cast %69 : vector<8xf32> to vector<8x1xf32>
    %71 = tpu.reciprocal %70 {approx = true} : vector<8x1xf32> -> vector<8x1xf32>
    %72 = vector.broadcast %71 : vector<8x1xf32> to vector<8x8xf32>
    %73 = arith.mulf %68, %72 : vector<8x8xf32>
    %cst_42 = arith.constant dense<0.000000e+00> : vector<8x8xf32>
    %74 = tpu.matmul %73, %61, %cst_42 {dimension_numbers = #tpu.dot_dimension_numbers<[1], [0], [0], [1], [0, 0, 1, 1], [], []>} : vector<8x8xf32>, vector<8x8xf32>, vector<8x8xf32> -> vector<8x8xf32>
    %c0_43 = arith.constant 0 : index
    %c0_44 = arith.constant 0 : index
    %c0_45 = arith.constant 0 : index
    %75 = vector.load %arg6[%c0_43, %c0_44, %c0_45] : memref<8x8x32xf32, #tpu.memory_space<vmem>>, vector<1x8x32xf32>
    %76 = vector.shape_cast %75 : vector<1x8x32xf32> to vector<8x32xf32>
    %cst_46 = arith.constant dense<0.000000e+00> : vector<8x32xf32>
    %77 = tpu.matmul %74, %76, %cst_46 {dimension_numbers = #tpu.dot_dimension_numbers<[1], [0], [0], [1], [0, 0, 1, 1], [], []>} : vector<8x8xf32>, vector<8x32xf32>, vector<8x32xf32> -> vector<8x32xf32>
    %c1_47 = arith.constant 1 : index
    %c0_48 = arith.constant 0 : index
    %c0_49 = arith.constant 0 : index
    %78 = vector.load %arg4[%c1_47, %c0_48, %c0_49] : memref<24x32x8xf32, #tpu.memory_space<vmem>>, vector<1x32x8xf32>
    %79 = vector.shape_cast %78 : vector<1x32x8xf32> to vector<32x8xf32>
    %cst_50 = arith.constant dense<0.000000e+00> : vector<8x8xf32>
    %80 = tpu.matmul %40, %79, %cst_50 {dimension_numbers = #tpu.dot_dimension_numbers<[1], [0], [0], [1], [0, 0, 1, 1], [], []>} : vector<8x32xf32>, vector<32x8xf32>, vector<8x8xf32> -> vector<8x8xf32>
    %c1_51 = arith.constant 1 : index
    %c0_52 = arith.constant 0 : index
    %c0_53 = arith.constant 0 : index
    %81 = vector.load %arg5[%c1_51, %c0_52, %c0_53] : memref<24x1x8xf32, #tpu.memory_space<vmem>>, vector<1x1x8xf32>
    %82 = vector.shape_cast %81 : vector<1x1x8xf32> to vector<1x8xf32>
    %83 = vector.broadcast %82 : vector<1x8xf32> to vector<8x8xf32>
    %84 = arith.addf %80, %83 : vector<8x8xf32>
    %c5 = arith.constant 5 : index
    %c0_54 = arith.constant 0 : index
    %c0_55 = arith.constant 0 : index
    %85 = vector.load %arg4[%c5, %c0_54, %c0_55] : memref<24x32x8xf32, #tpu.memory_space<vmem>>, vector<1x32x8xf32>
    %86 = vector.shape_cast %85 : vector<1x32x8xf32> to vector<32x8xf32>
    %cst_56 = arith.constant dense<0.000000e+00> : vector<8x8xf32>
    %87 = tpu.matmul %40, %86, %cst_56 {dimension_numbers = #tpu.dot_dimension_numbers<[1], [0], [0], [1], [0, 0, 1, 1], [], []>} : vector<8x32xf32>, vector<32x8xf32>, vector<8x8xf32> -> vector<8x8xf32>
    %c5_57 = arith.constant 5 : index
    %c0_58 = arith.constant 0 : index
    %c0_59 = arith.constant 0 : index
    %88 = vector.load %arg5[%c5_57, %c0_58, %c0_59] : memref<24x1x8xf32, #tpu.memory_space<vmem>>, vector<1x1x8xf32>
    %89 = vector.shape_cast %88 : vector<1x1x8xf32> to vector<1x8xf32>
    %90 = vector.broadcast %89 : vector<1x8xf32> to vector<8x8xf32>
    %91 = arith.addf %87, %90 : vector<8x8xf32>
    %c9 = arith.constant 9 : index
    %c0_60 = arith.constant 0 : index
    %c0_61 = arith.constant 0 : index
    %92 = vector.load %arg4[%c9, %c0_60, %c0_61] : memref<24x32x8xf32, #tpu.memory_space<vmem>>, vector<1x32x8xf32>
    %93 = vector.shape_cast %92 : vector<1x32x8xf32> to vector<32x8xf32>
    %cst_62 = arith.constant dense<0.000000e+00> : vector<8x8xf32>
    %94 = tpu.matmul %40, %93, %cst_62 {dimension_numbers = #tpu.dot_dimension_numbers<[1], [0], [0], [1], [0, 0, 1, 1], [], []>} : vector<8x32xf32>, vector<32x8xf32>, vector<8x8xf32> -> vector<8x8xf32>
    %c9_63 = arith.constant 9 : index
    %c0_64 = arith.constant 0 : index
    %c0_65 = arith.constant 0 : index
    %95 = vector.load %arg5[%c9_63, %c0_64, %c0_65] : memref<24x1x8xf32, #tpu.memory_space<vmem>>, vector<1x1x8xf32>
    %96 = vector.shape_cast %95 : vector<1x1x8xf32> to vector<1x8xf32>
    %97 = vector.broadcast %96 : vector<1x8xf32> to vector<8x8xf32>
    %98 = arith.addf %94, %97 : vector<8x8xf32>
    %cst_66 = arith.constant dense<0.000000e+00> : vector<8x8xf32>
    %99 = tpu.matmul %84, %91, %cst_66 {dimension_numbers = #tpu.dot_dimension_numbers<[1], [1], [0], [0], [0, 0, 1, 0], [], []>} : vector<8x8xf32>, vector<8x8xf32>, vector<8x8xf32> -> vector<8x8xf32>
    %100 = arith.addf %99, %10 : vector<8x8xf32>
    %cst_67 = arith.constant dense<0xFF800000> : vector<8xf32>
    %101 = vector.multi_reduction <maximumf>, %100, %cst_67 [1] : vector<8x8xf32> to vector<8xf32>
    %102 = vector.shape_cast %101 : vector<8xf32> to vector<8x1xf32>
    %103 = vector.broadcast %102 : vector<8x1xf32> to vector<8x8xf32>
    %104 = arith.subf %100, %103 : vector<8x8xf32>
    %105 = math.exp %104 : vector<8x8xf32>
    %cst_68 = arith.constant dense<0.000000e+00> : vector<8xf32>
    %106 = vector.multi_reduction <add>, %105, %cst_68 [1] : vector<8x8xf32> to vector<8xf32>
    %107 = vector.shape_cast %106 : vector<8xf32> to vector<8x1xf32>
    %108 = tpu.reciprocal %107 {approx = true} : vector<8x1xf32> -> vector<8x1xf32>
    %109 = vector.broadcast %108 : vector<8x1xf32> to vector<8x8xf32>
    %110 = arith.mulf %105, %109 : vector<8x8xf32>
    %cst_69 = arith.constant dense<0.000000e+00> : vector<8x8xf32>
    %111 = tpu.matmul %110, %98, %cst_69 {dimension_numbers = #tpu.dot_dimension_numbers<[1], [0], [0], [1], [0, 0, 1, 1], [], []>} : vector<8x8xf32>, vector<8x8xf32>, vector<8x8xf32> -> vector<8x8xf32>
    %c1_70 = arith.constant 1 : index
    %c0_71 = arith.constant 0 : index
    %c0_72 = arith.constant 0 : index
    %112 = vector.load %arg6[%c1_70, %c0_71, %c0_72] : memref<8x8x32xf32, #tpu.memory_space<vmem>>, vector<1x8x32xf32>
    %113 = vector.shape_cast %112 : vector<1x8x32xf32> to vector<8x32xf32>
    %cst_73 = arith.constant dense<0.000000e+00> : vector<8x32xf32>
    %114 = tpu.matmul %111, %113, %cst_73 {dimension_numbers = #tpu.dot_dimension_numbers<[1], [0], [0], [1], [0, 0, 1, 1], [], []>} : vector<8x8xf32>, vector<8x32xf32>, vector<8x32xf32> -> vector<8x32xf32>
    %115 = arith.addf %77, %114 : vector<8x32xf32>
    %c2 = arith.constant 2 : index
    %c0_74 = arith.constant 0 : index
    %c0_75 = arith.constant 0 : index
    %116 = vector.load %arg4[%c2, %c0_74, %c0_75] : memref<24x32x8xf32, #tpu.memory_space<vmem>>, vector<1x32x8xf32>
    %117 = vector.shape_cast %116 : vector<1x32x8xf32> to vector<32x8xf32>
    %cst_76 = arith.constant dense<0.000000e+00> : vector<8x8xf32>
    %118 = tpu.matmul %40, %117, %cst_76 {dimension_numbers = #tpu.dot_dimension_numbers<[1], [0], [0], [1], [0, 0, 1, 1], [], []>} : vector<8x32xf32>, vector<32x8xf32>, vector<8x8xf32> -> vector<8x8xf32>
    %c2_77 = arith.constant 2 : index
    %c0_78 = arith.constant 0 : index
    %c0_79 = arith.constant 0 : index
    %119 = vector.load %arg5[%c2_77, %c0_78, %c0_79] : memref<24x1x8xf32, #tpu.memory_space<vmem>>, vector<1x1x8xf32>
    %120 = vector.shape_cast %119 : vector<1x1x8xf32> to vector<1x8xf32>
    %121 = vector.broadcast %120 : vector<1x8xf32> to vector<8x8xf32>
    %122 = arith.addf %118, %121 : vector<8x8xf32>
    %c6 = arith.constant 6 : index
    %c0_80 = arith.constant 0 : index
    %c0_81 = arith.constant 0 : index
    %123 = vector.load %arg4[%c6, %c0_80, %c0_81] : memref<24x32x8xf32, #tpu.memory_space<vmem>>, vector<1x32x8xf32>
    %124 = vector.shape_cast %123 : vector<1x32x8xf32> to vector<32x8xf32>
    %cst_82 = arith.constant dense<0.000000e+00> : vector<8x8xf32>
    %125 = tpu.matmul %40, %124, %cst_82 {dimension_numbers = #tpu.dot_dimension_numbers<[1], [0], [0], [1], [0, 0, 1, 1], [], []>} : vector<8x32xf32>, vector<32x8xf32>, vector<8x8xf32> -> vector<8x8xf32>
    %c6_83 = arith.constant 6 : index
    %c0_84 = arith.constant 0 : index
    %c0_85 = arith.constant 0 : index
    %126 = vector.load %arg5[%c6_83, %c0_84, %c0_85] : memref<24x1x8xf32, #tpu.memory_space<vmem>>, vector<1x1x8xf32>
    %127 = vector.shape_cast %126 : vector<1x1x8xf32> to vector<1x8xf32>
    %128 = vector.broadcast %127 : vector<1x8xf32> to vector<8x8xf32>
    %129 = arith.addf %125, %128 : vector<8x8xf32>
    %c10 = arith.constant 10 : index
    %c0_86 = arith.constant 0 : index
    %c0_87 = arith.constant 0 : index
    %130 = vector.load %arg4[%c10, %c0_86, %c0_87] : memref<24x32x8xf32, #tpu.memory_space<vmem>>, vector<1x32x8xf32>
    %131 = vector.shape_cast %130 : vector<1x32x8xf32> to vector<32x8xf32>
    %cst_88 = arith.constant dense<0.000000e+00> : vector<8x8xf32>
    %132 = tpu.matmul %40, %131, %cst_88 {dimension_numbers = #tpu.dot_dimension_numbers<[1], [0], [0], [1], [0, 0, 1, 1], [], []>} : vector<8x32xf32>, vector<32x8xf32>, vector<8x8xf32> -> vector<8x8xf32>
    %c10_89 = arith.constant 10 : index
    %c0_90 = arith.constant 0 : index
    %c0_91 = arith.constant 0 : index
    %133 = vector.load %arg5[%c10_89, %c0_90, %c0_91] : memref<24x1x8xf32, #tpu.memory_space<vmem>>, vector<1x1x8xf32>
    %134 = vector.shape_cast %133 : vector<1x1x8xf32> to vector<1x8xf32>
    %135 = vector.broadcast %134 : vector<1x8xf32> to vector<8x8xf32>
    %136 = arith.addf %132, %135 : vector<8x8xf32>
    %cst_92 = arith.constant dense<0.000000e+00> : vector<8x8xf32>
    %137 = tpu.matmul %122, %129, %cst_92 {dimension_numbers = #tpu.dot_dimension_numbers<[1], [1], [0], [0], [0, 0, 1, 0], [], []>} : vector<8x8xf32>, vector<8x8xf32>, vector<8x8xf32> -> vector<8x8xf32>
    %138 = arith.addf %137, %10 : vector<8x8xf32>
    %cst_93 = arith.constant dense<0xFF800000> : vector<8xf32>
    %139 = vector.multi_reduction <maximumf>, %138, %cst_93 [1] : vector<8x8xf32> to vector<8xf32>
    %140 = vector.shape_cast %139 : vector<8xf32> to vector<8x1xf32>
    %141 = vector.broadcast %140 : vector<8x1xf32> to vector<8x8xf32>
    %142 = arith.subf %138, %141 : vector<8x8xf32>
    %143 = math.exp %142 : vector<8x8xf32>
    %cst_94 = arith.constant dense<0.000000e+00> : vector<8xf32>
    %144 = vector.multi_reduction <add>, %143, %cst_94 [1] : vector<8x8xf32> to vector<8xf32>
    %145 = vector.shape_cast %144 : vector<8xf32> to vector<8x1xf32>
    %146 = tpu.reciprocal %145 {approx = true} : vector<8x1xf32> -> vector<8x1xf32>
    %147 = vector.broadcast %146 : vector<8x1xf32> to vector<8x8xf32>
    %148 = arith.mulf %143, %147 : vector<8x8xf32>
    %cst_95 = arith.constant dense<0.000000e+00> : vector<8x8xf32>
    %149 = tpu.matmul %148, %136, %cst_95 {dimension_numbers = #tpu.dot_dimension_numbers<[1], [0], [0], [1], [0, 0, 1, 1], [], []>} : vector<8x8xf32>, vector<8x8xf32>, vector<8x8xf32> -> vector<8x8xf32>
    %c2_96 = arith.constant 2 : index
    %c0_97 = arith.constant 0 : index
    %c0_98 = arith.constant 0 : index
    %150 = vector.load %arg6[%c2_96, %c0_97, %c0_98] : memref<8x8x32xf32, #tpu.memory_space<vmem>>, vector<1x8x32xf32>
    %151 = vector.shape_cast %150 : vector<1x8x32xf32> to vector<8x32xf32>
    %cst_99 = arith.constant dense<0.000000e+00> : vector<8x32xf32>
    %152 = tpu.matmul %149, %151, %cst_99 {dimension_numbers = #tpu.dot_dimension_numbers<[1], [0], [0], [1], [0, 0, 1, 1], [], []>} : vector<8x8xf32>, vector<8x32xf32>, vector<8x32xf32> -> vector<8x32xf32>
    %153 = arith.addf %115, %152 : vector<8x32xf32>
    %c3 = arith.constant 3 : index
    %c0_100 = arith.constant 0 : index
    %c0_101 = arith.constant 0 : index
    %154 = vector.load %arg4[%c3, %c0_100, %c0_101] : memref<24x32x8xf32, #tpu.memory_space<vmem>>, vector<1x32x8xf32>
    %155 = vector.shape_cast %154 : vector<1x32x8xf32> to vector<32x8xf32>
    %cst_102 = arith.constant dense<0.000000e+00> : vector<8x8xf32>
    %156 = tpu.matmul %40, %155, %cst_102 {dimension_numbers = #tpu.dot_dimension_numbers<[1], [0], [0], [1], [0, 0, 1, 1], [], []>} : vector<8x32xf32>, vector<32x8xf32>, vector<8x8xf32> -> vector<8x8xf32>
    %c3_103 = arith.constant 3 : index
    %c0_104 = arith.constant 0 : index
    %c0_105 = arith.constant 0 : index
    %157 = vector.load %arg5[%c3_103, %c0_104, %c0_105] : memref<24x1x8xf32, #tpu.memory_space<vmem>>, vector<1x1x8xf32>
    %158 = vector.shape_cast %157 : vector<1x1x8xf32> to vector<1x8xf32>
    %159 = vector.broadcast %158 : vector<1x8xf32> to vector<8x8xf32>
    %160 = arith.addf %156, %159 : vector<8x8xf32>
    %c7 = arith.constant 7 : index
    %c0_106 = arith.constant 0 : index
    %c0_107 = arith.constant 0 : index
    %161 = vector.load %arg4[%c7, %c0_106, %c0_107] : memref<24x32x8xf32, #tpu.memory_space<vmem>>, vector<1x32x8xf32>
    %162 = vector.shape_cast %161 : vector<1x32x8xf32> to vector<32x8xf32>
    %cst_108 = arith.constant dense<0.000000e+00> : vector<8x8xf32>
    %163 = tpu.matmul %40, %162, %cst_108 {dimension_numbers = #tpu.dot_dimension_numbers<[1], [0], [0], [1], [0, 0, 1, 1], [], []>} : vector<8x32xf32>, vector<32x8xf32>, vector<8x8xf32> -> vector<8x8xf32>
    %c7_109 = arith.constant 7 : index
    %c0_110 = arith.constant 0 : index
    %c0_111 = arith.constant 0 : index
    %164 = vector.load %arg5[%c7_109, %c0_110, %c0_111] : memref<24x1x8xf32, #tpu.memory_space<vmem>>, vector<1x1x8xf32>
    %165 = vector.shape_cast %164 : vector<1x1x8xf32> to vector<1x8xf32>
    %166 = vector.broadcast %165 : vector<1x8xf32> to vector<8x8xf32>
    %167 = arith.addf %163, %166 : vector<8x8xf32>
    %c11 = arith.constant 11 : index
    %c0_112 = arith.constant 0 : index
    %c0_113 = arith.constant 0 : index
    %168 = vector.load %arg4[%c11, %c0_112, %c0_113] : memref<24x32x8xf32, #tpu.memory_space<vmem>>, vector<1x32x8xf32>
    %169 = vector.shape_cast %168 : vector<1x32x8xf32> to vector<32x8xf32>
    %cst_114 = arith.constant dense<0.000000e+00> : vector<8x8xf32>
    %170 = tpu.matmul %40, %169, %cst_114 {dimension_numbers = #tpu.dot_dimension_numbers<[1], [0], [0], [1], [0, 0, 1, 1], [], []>} : vector<8x32xf32>, vector<32x8xf32>, vector<8x8xf32> -> vector<8x8xf32>
    %c11_115 = arith.constant 11 : index
    %c0_116 = arith.constant 0 : index
    %c0_117 = arith.constant 0 : index
    %171 = vector.load %arg5[%c11_115, %c0_116, %c0_117] : memref<24x1x8xf32, #tpu.memory_space<vmem>>, vector<1x1x8xf32>
    %172 = vector.shape_cast %171 : vector<1x1x8xf32> to vector<1x8xf32>
    %173 = vector.broadcast %172 : vector<1x8xf32> to vector<8x8xf32>
    %174 = arith.addf %170, %173 : vector<8x8xf32>
    %cst_118 = arith.constant dense<0.000000e+00> : vector<8x8xf32>
    %175 = tpu.matmul %160, %167, %cst_118 {dimension_numbers = #tpu.dot_dimension_numbers<[1], [1], [0], [0], [0, 0, 1, 0], [], []>} : vector<8x8xf32>, vector<8x8xf32>, vector<8x8xf32> -> vector<8x8xf32>
    %176 = arith.addf %175, %10 : vector<8x8xf32>
    %cst_119 = arith.constant dense<0xFF800000> : vector<8xf32>
    %177 = vector.multi_reduction <maximumf>, %176, %cst_119 [1] : vector<8x8xf32> to vector<8xf32>
    %178 = vector.shape_cast %177 : vector<8xf32> to vector<8x1xf32>
    %179 = vector.broadcast %178 : vector<8x1xf32> to vector<8x8xf32>
    %180 = arith.subf %176, %179 : vector<8x8xf32>
    %181 = math.exp %180 : vector<8x8xf32>
    %cst_120 = arith.constant dense<0.000000e+00> : vector<8xf32>
    %182 = vector.multi_reduction <add>, %181, %cst_120 [1] : vector<8x8xf32> to vector<8xf32>
    %183 = vector.shape_cast %182 : vector<8xf32> to vector<8x1xf32>
    %184 = tpu.reciprocal %183 {approx = true} : vector<8x1xf32> -> vector<8x1xf32>
    %185 = vector.broadcast %184 : vector<8x1xf32> to vector<8x8xf32>
    %186 = arith.mulf %181, %185 : vector<8x8xf32>
    %cst_121 = arith.constant dense<0.000000e+00> : vector<8x8xf32>
    %187 = tpu.matmul %186, %174, %cst_121 {dimension_numbers = #tpu.dot_dimension_numbers<[1], [0], [0], [1], [0, 0, 1, 1], [], []>} : vector<8x8xf32>, vector<8x8xf32>, vector<8x8xf32> -> vector<8x8xf32>
    %c3_122 = arith.constant 3 : index
    %c0_123 = arith.constant 0 : index
    %c0_124 = arith.constant 0 : index
    %188 = vector.load %arg6[%c3_122, %c0_123, %c0_124] : memref<8x8x32xf32, #tpu.memory_space<vmem>>, vector<1x8x32xf32>
    %189 = vector.shape_cast %188 : vector<1x8x32xf32> to vector<8x32xf32>
    %cst_125 = arith.constant dense<0.000000e+00> : vector<8x32xf32>
    %190 = tpu.matmul %187, %189, %cst_125 {dimension_numbers = #tpu.dot_dimension_numbers<[1], [0], [0], [1], [0, 0, 1, 1], [], []>} : vector<8x8xf32>, vector<8x32xf32>, vector<8x32xf32> -> vector<8x32xf32>
    %191 = arith.addf %153, %190 : vector<8x32xf32>
    %192 = arith.addf %1, %191 : vector<8x32xf32>
    %c2_126 = arith.constant 2 : index
    %c0_127 = arith.constant 0 : index
    %193 = vector.load %arg8[%c2_126, %c0_127] : memref<10x64xf32, #tpu.memory_space<vmem>>, vector<1x32xf32>
    %194 = vector.broadcast %193 : vector<1x32xf32> to vector<8x32xf32>
    %195 = arith.addf %192, %194 : vector<8x32xf32>
    %c3_128 = arith.constant 3 : index
    %c0_129 = arith.constant 0 : index
    %196 = vector.load %arg8[%c3_128, %c0_129] : memref<10x64xf32, #tpu.memory_space<vmem>>, vector<1x32xf32>
    %c4_130 = arith.constant 4 : index
    %c0_131 = arith.constant 0 : index
    %197 = vector.load %arg8[%c4_130, %c0_131] : memref<10x64xf32, #tpu.memory_space<vmem>>, vector<1x32xf32>
    %cst_132 = arith.constant dense<0.000000e+00> : vector<8xf32>
    %198 = vector.multi_reduction <add>, %195, %cst_132 [1] : vector<8x32xf32> to vector<8xf32>
    %199 = vector.shape_cast %198 : vector<8xf32> to vector<8x1xf32>
    %cst_133 = arith.constant 3.200000e+01 : f32
    %200 = vector.broadcast %cst_133 : f32 to vector<8x1xf32>
    %201 = arith.divf %199, %200 : vector<8x1xf32>
    %202 = vector.broadcast %201 : vector<8x1xf32> to vector<8x32xf32>
    %203 = arith.subf %195, %202 : vector<8x32xf32>
    %204 = arith.mulf %203, %203 : vector<8x32xf32>
    %cst_134 = arith.constant dense<0.000000e+00> : vector<8xf32>
    %205 = vector.multi_reduction <add>, %204, %cst_134 [1] : vector<8x32xf32> to vector<8xf32>
    %206 = vector.shape_cast %205 : vector<8xf32> to vector<8x1xf32>
    %cst_135 = arith.constant 3.200000e+01 : f32
    %207 = vector.broadcast %cst_135 : f32 to vector<8x1xf32>
    %208 = arith.divf %206, %207 : vector<8x1xf32>
    %209 = vector.broadcast %201 : vector<8x1xf32> to vector<8x32xf32>
    %210 = arith.subf %195, %209 : vector<8x32xf32>
    %cst_136 = arith.constant 9.99999997E-7 : f32
    %211 = vector.broadcast %cst_136 : f32 to vector<8x1xf32>
    %212 = arith.addf %208, %211 : vector<8x1xf32>
    %213 = math.rsqrt %212 : vector<8x1xf32>
    %214 = vector.broadcast %213 : vector<8x1xf32> to vector<8x32xf32>
    %215 = arith.mulf %210, %214 : vector<8x32xf32>
    %216 = vector.broadcast %196 : vector<1x32xf32> to vector<8x32xf32>
    %217 = arith.mulf %215, %216 : vector<8x32xf32>
    %218 = vector.broadcast %197 : vector<1x32xf32> to vector<8x32xf32>
    %219 = arith.addf %217, %218 : vector<8x32xf32>
    %c12 = arith.constant 12 : index
    %c0_137 = arith.constant 0 : index
    %c0_138 = arith.constant 0 : index
    %220 = vector.load %arg4[%c12, %c0_137, %c0_138] : memref<24x32x8xf32, #tpu.memory_space<vmem>>, vector<1x32x8xf32>
    %221 = vector.shape_cast %220 : vector<1x32x8xf32> to vector<32x8xf32>
    %cst_139 = arith.constant dense<0.000000e+00> : vector<8x8xf32>
    %222 = tpu.matmul %219, %221, %cst_139 {dimension_numbers = #tpu.dot_dimension_numbers<[1], [0], [0], [1], [0, 0, 1, 1], [], []>} : vector<8x32xf32>, vector<32x8xf32>, vector<8x8xf32> -> vector<8x8xf32>
    %c12_140 = arith.constant 12 : index
    %c0_141 = arith.constant 0 : index
    %c0_142 = arith.constant 0 : index
    %223 = vector.load %arg5[%c12_140, %c0_141, %c0_142] : memref<24x1x8xf32, #tpu.memory_space<vmem>>, vector<1x1x8xf32>
    %224 = vector.shape_cast %223 : vector<1x1x8xf32> to vector<1x8xf32>
    %225 = vector.broadcast %224 : vector<1x8xf32> to vector<8x8xf32>
    %226 = arith.addf %222, %225 : vector<8x8xf32>
    %c16 = arith.constant 16 : index
    %c0_143 = arith.constant 0 : index
    %c0_144 = arith.constant 0 : index
    %227 = vector.load %arg4[%c16, %c0_143, %c0_144] : memref<24x32x8xf32, #tpu.memory_space<vmem>>, vector<1x32x8xf32>
    %228 = vector.shape_cast %227 : vector<1x32x8xf32> to vector<32x8xf32>
    %cst_145 = arith.constant dense<0.000000e+00> : vector<16x8xf32>
    %229 = tpu.matmul %3, %228, %cst_145 {dimension_numbers = #tpu.dot_dimension_numbers<[1], [0], [0], [1], [0, 0, 1, 1], [], []>} : vector<16x32xf32>, vector<32x8xf32>, vector<16x8xf32> -> vector<16x8xf32>
    %c16_146 = arith.constant 16 : index
    %c0_147 = arith.constant 0 : index
    %c0_148 = arith.constant 0 : index
    %230 = vector.load %arg5[%c16_146, %c0_147, %c0_148] : memref<24x1x8xf32, #tpu.memory_space<vmem>>, vector<1x1x8xf32>
    %231 = vector.shape_cast %230 : vector<1x1x8xf32> to vector<1x8xf32>
    %232 = vector.broadcast %231 : vector<1x8xf32> to vector<16x8xf32>
    %233 = arith.addf %229, %232 : vector<16x8xf32>
    %c20 = arith.constant 20 : index
    %c0_149 = arith.constant 0 : index
    %c0_150 = arith.constant 0 : index
    %234 = vector.load %arg4[%c20, %c0_149, %c0_150] : memref<24x32x8xf32, #tpu.memory_space<vmem>>, vector<1x32x8xf32>
    %235 = vector.shape_cast %234 : vector<1x32x8xf32> to vector<32x8xf32>
    %cst_151 = arith.constant dense<0.000000e+00> : vector<16x8xf32>
    %236 = tpu.matmul %3, %235, %cst_151 {dimension_numbers = #tpu.dot_dimension_numbers<[1], [0], [0], [1], [0, 0, 1, 1], [], []>} : vector<16x32xf32>, vector<32x8xf32>, vector<16x8xf32> -> vector<16x8xf32>
    %c20_152 = arith.constant 20 : index
    %c0_153 = arith.constant 0 : index
    %c0_154 = arith.constant 0 : index
    %237 = vector.load %arg5[%c20_152, %c0_153, %c0_154] : memref<24x1x8xf32, #tpu.memory_space<vmem>>, vector<1x1x8xf32>
    %238 = vector.shape_cast %237 : vector<1x1x8xf32> to vector<1x8xf32>
    %239 = vector.broadcast %238 : vector<1x8xf32> to vector<16x8xf32>
    %240 = arith.addf %236, %239 : vector<16x8xf32>
    %cst_155 = arith.constant dense<0.000000e+00> : vector<8x16xf32>
    %241 = tpu.matmul %226, %233, %cst_155 {dimension_numbers = #tpu.dot_dimension_numbers<[1], [1], [0], [0], [0, 0, 1, 0], [], []>} : vector<8x8xf32>, vector<16x8xf32>, vector<8x16xf32> -> vector<8x16xf32>
    %242 = vector.broadcast %16 : vector<1x16xf32> to vector<8x16xf32>
    %243 = arith.addf %241, %242 : vector<8x16xf32>
    %cst_156 = arith.constant dense<0xFF800000> : vector<8xf32>
    %244 = vector.multi_reduction <maximumf>, %243, %cst_156 [1] : vector<8x16xf32> to vector<8xf32>
    %245 = vector.shape_cast %244 : vector<8xf32> to vector<8x1xf32>
    %246 = vector.broadcast %245 : vector<8x1xf32> to vector<8x16xf32>
    %247 = arith.subf %243, %246 : vector<8x16xf32>
    %248 = math.exp %247 : vector<8x16xf32>
    %cst_157 = arith.constant dense<0.000000e+00> : vector<8xf32>
    %249 = vector.multi_reduction <add>, %248, %cst_157 [1] : vector<8x16xf32> to vector<8xf32>
    %250 = vector.shape_cast %249 : vector<8xf32> to vector<8x1xf32>
    %251 = tpu.reciprocal %250 {approx = true} : vector<8x1xf32> -> vector<8x1xf32>
    %252 = vector.broadcast %251 : vector<8x1xf32> to vector<8x16xf32>
    %253 = arith.mulf %248, %252 : vector<8x16xf32>
    %cst_158 = arith.constant dense<0.000000e+00> : vector<8x8xf32>
    %254 = tpu.matmul %253, %240, %cst_158 {dimension_numbers = #tpu.dot_dimension_numbers<[1], [0], [0], [1], [0, 0, 1, 1], [], []>} : vector<8x16xf32>, vector<16x8xf32>, vector<8x8xf32> -> vector<8x8xf32>
    %c4_159 = arith.constant 4 : index
    %c0_160 = arith.constant 0 : index
    %c0_161 = arith.constant 0 : index
    %255 = vector.load %arg6[%c4_159, %c0_160, %c0_161] : memref<8x8x32xf32, #tpu.memory_space<vmem>>, vector<1x8x32xf32>
    %256 = vector.shape_cast %255 : vector<1x8x32xf32> to vector<8x32xf32>
    %cst_162 = arith.constant dense<0.000000e+00> : vector<8x32xf32>
    %257 = tpu.matmul %254, %256, %cst_162 {dimension_numbers = #tpu.dot_dimension_numbers<[1], [0], [0], [1], [0, 0, 1, 1], [], []>} : vector<8x8xf32>, vector<8x32xf32>, vector<8x32xf32> -> vector<8x32xf32>
    %c13 = arith.constant 13 : index
    %c0_163 = arith.constant 0 : index
    %c0_164 = arith.constant 0 : index
    %258 = vector.load %arg4[%c13, %c0_163, %c0_164] : memref<24x32x8xf32, #tpu.memory_space<vmem>>, vector<1x32x8xf32>
    %259 = vector.shape_cast %258 : vector<1x32x8xf32> to vector<32x8xf32>
    %cst_165 = arith.constant dense<0.000000e+00> : vector<8x8xf32>
    %260 = tpu.matmul %219, %259, %cst_165 {dimension_numbers = #tpu.dot_dimension_numbers<[1], [0], [0], [1], [0, 0, 1, 1], [], []>} : vector<8x32xf32>, vector<32x8xf32>, vector<8x8xf32> -> vector<8x8xf32>
    %c13_166 = arith.constant 13 : index
    %c0_167 = arith.constant 0 : index
    %c0_168 = arith.constant 0 : index
    %261 = vector.load %arg5[%c13_166, %c0_167, %c0_168] : memref<24x1x8xf32, #tpu.memory_space<vmem>>, vector<1x1x8xf32>
    %262 = vector.shape_cast %261 : vector<1x1x8xf32> to vector<1x8xf32>
    %263 = vector.broadcast %262 : vector<1x8xf32> to vector<8x8xf32>
    %264 = arith.addf %260, %263 : vector<8x8xf32>
    %c17 = arith.constant 17 : index
    %c0_169 = arith.constant 0 : index
    %c0_170 = arith.constant 0 : index
    %265 = vector.load %arg4[%c17, %c0_169, %c0_170] : memref<24x32x8xf32, #tpu.memory_space<vmem>>, vector<1x32x8xf32>
    %266 = vector.shape_cast %265 : vector<1x32x8xf32> to vector<32x8xf32>
    %cst_171 = arith.constant dense<0.000000e+00> : vector<16x8xf32>
    %267 = tpu.matmul %3, %266, %cst_171 {dimension_numbers = #tpu.dot_dimension_numbers<[1], [0], [0], [1], [0, 0, 1, 1], [], []>} : vector<16x32xf32>, vector<32x8xf32>, vector<16x8xf32> -> vector<16x8xf32>
    %c17_172 = arith.constant 17 : index
    %c0_173 = arith.constant 0 : index
    %c0_174 = arith.constant 0 : index
    %268 = vector.load %arg5[%c17_172, %c0_173, %c0_174] : memref<24x1x8xf32, #tpu.memory_space<vmem>>, vector<1x1x8xf32>
    %269 = vector.shape_cast %268 : vector<1x1x8xf32> to vector<1x8xf32>
    %270 = vector.broadcast %269 : vector<1x8xf32> to vector<16x8xf32>
    %271 = arith.addf %267, %270 : vector<16x8xf32>
    %c21 = arith.constant 21 : index
    %c0_175 = arith.constant 0 : index
    %c0_176 = arith.constant 0 : index
    %272 = vector.load %arg4[%c21, %c0_175, %c0_176] : memref<24x32x8xf32, #tpu.memory_space<vmem>>, vector<1x32x8xf32>
    %273 = vector.shape_cast %272 : vector<1x32x8xf32> to vector<32x8xf32>
    %cst_177 = arith.constant dense<0.000000e+00> : vector<16x8xf32>
    %274 = tpu.matmul %3, %273, %cst_177 {dimension_numbers = #tpu.dot_dimension_numbers<[1], [0], [0], [1], [0, 0, 1, 1], [], []>} : vector<16x32xf32>, vector<32x8xf32>, vector<16x8xf32> -> vector<16x8xf32>
    %c21_178 = arith.constant 21 : index
    %c0_179 = arith.constant 0 : index
    %c0_180 = arith.constant 0 : index
    %275 = vector.load %arg5[%c21_178, %c0_179, %c0_180] : memref<24x1x8xf32, #tpu.memory_space<vmem>>, vector<1x1x8xf32>
    %276 = vector.shape_cast %275 : vector<1x1x8xf32> to vector<1x8xf32>
    %277 = vector.broadcast %276 : vector<1x8xf32> to vector<16x8xf32>
    %278 = arith.addf %274, %277 : vector<16x8xf32>
    %cst_181 = arith.constant dense<0.000000e+00> : vector<8x16xf32>
    %279 = tpu.matmul %264, %271, %cst_181 {dimension_numbers = #tpu.dot_dimension_numbers<[1], [1], [0], [0], [0, 0, 1, 0], [], []>} : vector<8x8xf32>, vector<16x8xf32>, vector<8x16xf32> -> vector<8x16xf32>
    %280 = vector.broadcast %16 : vector<1x16xf32> to vector<8x16xf32>
    %281 = arith.addf %279, %280 : vector<8x16xf32>
    %cst_182 = arith.constant dense<0xFF800000> : vector<8xf32>
    %282 = vector.multi_reduction <maximumf>, %281, %cst_182 [1] : vector<8x16xf32> to vector<8xf32>
    %283 = vector.shape_cast %282 : vector<8xf32> to vector<8x1xf32>
    %284 = vector.broadcast %283 : vector<8x1xf32> to vector<8x16xf32>
    %285 = arith.subf %281, %284 : vector<8x16xf32>
    %286 = math.exp %285 : vector<8x16xf32>
    %cst_183 = arith.constant dense<0.000000e+00> : vector<8xf32>
    %287 = vector.multi_reduction <add>, %286, %cst_183 [1] : vector<8x16xf32> to vector<8xf32>
    %288 = vector.shape_cast %287 : vector<8xf32> to vector<8x1xf32>
    %289 = tpu.reciprocal %288 {approx = true} : vector<8x1xf32> -> vector<8x1xf32>
    %290 = vector.broadcast %289 : vector<8x1xf32> to vector<8x16xf32>
    %291 = arith.mulf %286, %290 : vector<8x16xf32>
    %cst_184 = arith.constant dense<0.000000e+00> : vector<8x8xf32>
    %292 = tpu.matmul %291, %278, %cst_184 {dimension_numbers = #tpu.dot_dimension_numbers<[1], [0], [0], [1], [0, 0, 1, 1], [], []>} : vector<8x16xf32>, vector<16x8xf32>, vector<8x8xf32> -> vector<8x8xf32>
    %c5_185 = arith.constant 5 : index
    %c0_186 = arith.constant 0 : index
    %c0_187 = arith.constant 0 : index
    %293 = vector.load %arg6[%c5_185, %c0_186, %c0_187] : memref<8x8x32xf32, #tpu.memory_space<vmem>>, vector<1x8x32xf32>
    %294 = vector.shape_cast %293 : vector<1x8x32xf32> to vector<8x32xf32>
    %cst_188 = arith.constant dense<0.000000e+00> : vector<8x32xf32>
    %295 = tpu.matmul %292, %294, %cst_188 {dimension_numbers = #tpu.dot_dimension_numbers<[1], [0], [0], [1], [0, 0, 1, 1], [], []>} : vector<8x8xf32>, vector<8x32xf32>, vector<8x32xf32> -> vector<8x32xf32>
    %296 = arith.addf %257, %295 : vector<8x32xf32>
    %c14 = arith.constant 14 : index
    %c0_189 = arith.constant 0 : index
    %c0_190 = arith.constant 0 : index
    %297 = vector.load %arg4[%c14, %c0_189, %c0_190] : memref<24x32x8xf32, #tpu.memory_space<vmem>>, vector<1x32x8xf32>
    %298 = vector.shape_cast %297 : vector<1x32x8xf32> to vector<32x8xf32>
    %cst_191 = arith.constant dense<0.000000e+00> : vector<8x8xf32>
    %299 = tpu.matmul %219, %298, %cst_191 {dimension_numbers = #tpu.dot_dimension_numbers<[1], [0], [0], [1], [0, 0, 1, 1], [], []>} : vector<8x32xf32>, vector<32x8xf32>, vector<8x8xf32> -> vector<8x8xf32>
    %c14_192 = arith.constant 14 : index
    %c0_193 = arith.constant 0 : index
    %c0_194 = arith.constant 0 : index
    %300 = vector.load %arg5[%c14_192, %c0_193, %c0_194] : memref<24x1x8xf32, #tpu.memory_space<vmem>>, vector<1x1x8xf32>
    %301 = vector.shape_cast %300 : vector<1x1x8xf32> to vector<1x8xf32>
    %302 = vector.broadcast %301 : vector<1x8xf32> to vector<8x8xf32>
    %303 = arith.addf %299, %302 : vector<8x8xf32>
    %c18 = arith.constant 18 : index
    %c0_195 = arith.constant 0 : index
    %c0_196 = arith.constant 0 : index
    %304 = vector.load %arg4[%c18, %c0_195, %c0_196] : memref<24x32x8xf32, #tpu.memory_space<vmem>>, vector<1x32x8xf32>
    %305 = vector.shape_cast %304 : vector<1x32x8xf32> to vector<32x8xf32>
    %cst_197 = arith.constant dense<0.000000e+00> : vector<16x8xf32>
    %306 = tpu.matmul %3, %305, %cst_197 {dimension_numbers = #tpu.dot_dimension_numbers<[1], [0], [0], [1], [0, 0, 1, 1], [], []>} : vector<16x32xf32>, vector<32x8xf32>, vector<16x8xf32> -> vector<16x8xf32>
    %c18_198 = arith.constant 18 : index
    %c0_199 = arith.constant 0 : index
    %c0_200 = arith.constant 0 : index
    %307 = vector.load %arg5[%c18_198, %c0_199, %c0_200] : memref<24x1x8xf32, #tpu.memory_space<vmem>>, vector<1x1x8xf32>
    %308 = vector.shape_cast %307 : vector<1x1x8xf32> to vector<1x8xf32>
    %309 = vector.broadcast %308 : vector<1x8xf32> to vector<16x8xf32>
    %310 = arith.addf %306, %309 : vector<16x8xf32>
    %c22 = arith.constant 22 : index
    %c0_201 = arith.constant 0 : index
    %c0_202 = arith.constant 0 : index
    %311 = vector.load %arg4[%c22, %c0_201, %c0_202] : memref<24x32x8xf32, #tpu.memory_space<vmem>>, vector<1x32x8xf32>
    %312 = vector.shape_cast %311 : vector<1x32x8xf32> to vector<32x8xf32>
    %cst_203 = arith.constant dense<0.000000e+00> : vector<16x8xf32>
    %313 = tpu.matmul %3, %312, %cst_203 {dimension_numbers = #tpu.dot_dimension_numbers<[1], [0], [0], [1], [0, 0, 1, 1], [], []>} : vector<16x32xf32>, vector<32x8xf32>, vector<16x8xf32> -> vector<16x8xf32>
    %c22_204 = arith.constant 22 : index
    %c0_205 = arith.constant 0 : index
    %c0_206 = arith.constant 0 : index
    %314 = vector.load %arg5[%c22_204, %c0_205, %c0_206] : memref<24x1x8xf32, #tpu.memory_space<vmem>>, vector<1x1x8xf32>
    %315 = vector.shape_cast %314 : vector<1x1x8xf32> to vector<1x8xf32>
    %316 = vector.broadcast %315 : vector<1x8xf32> to vector<16x8xf32>
    %317 = arith.addf %313, %316 : vector<16x8xf32>
    %cst_207 = arith.constant dense<0.000000e+00> : vector<8x16xf32>
    %318 = tpu.matmul %303, %310, %cst_207 {dimension_numbers = #tpu.dot_dimension_numbers<[1], [1], [0], [0], [0, 0, 1, 0], [], []>} : vector<8x8xf32>, vector<16x8xf32>, vector<8x16xf32> -> vector<8x16xf32>
    %319 = vector.broadcast %16 : vector<1x16xf32> to vector<8x16xf32>
    %320 = arith.addf %318, %319 : vector<8x16xf32>
    %cst_208 = arith.constant dense<0xFF800000> : vector<8xf32>
    %321 = vector.multi_reduction <maximumf>, %320, %cst_208 [1] : vector<8x16xf32> to vector<8xf32>
    %322 = vector.shape_cast %321 : vector<8xf32> to vector<8x1xf32>
    %323 = vector.broadcast %322 : vector<8x1xf32> to vector<8x16xf32>
    %324 = arith.subf %320, %323 : vector<8x16xf32>
    %325 = math.exp %324 : vector<8x16xf32>
    %cst_209 = arith.constant dense<0.000000e+00> : vector<8xf32>
    %326 = vector.multi_reduction <add>, %325, %cst_209 [1] : vector<8x16xf32> to vector<8xf32>
    %327 = vector.shape_cast %326 : vector<8xf32> to vector<8x1xf32>
    %328 = tpu.reciprocal %327 {approx = true} : vector<8x1xf32> -> vector<8x1xf32>
    %329 = vector.broadcast %328 : vector<8x1xf32> to vector<8x16xf32>
    %330 = arith.mulf %325, %329 : vector<8x16xf32>
    %cst_210 = arith.constant dense<0.000000e+00> : vector<8x8xf32>
    %331 = tpu.matmul %330, %317, %cst_210 {dimension_numbers = #tpu.dot_dimension_numbers<[1], [0], [0], [1], [0, 0, 1, 1], [], []>} : vector<8x16xf32>, vector<16x8xf32>, vector<8x8xf32> -> vector<8x8xf32>
    %c6_211 = arith.constant 6 : index
    %c0_212 = arith.constant 0 : index
    %c0_213 = arith.constant 0 : index
    %332 = vector.load %arg6[%c6_211, %c0_212, %c0_213] : memref<8x8x32xf32, #tpu.memory_space<vmem>>, vector<1x8x32xf32>
    %333 = vector.shape_cast %332 : vector<1x8x32xf32> to vector<8x32xf32>
    %cst_214 = arith.constant dense<0.000000e+00> : vector<8x32xf32>
    %334 = tpu.matmul %331, %333, %cst_214 {dimension_numbers = #tpu.dot_dimension_numbers<[1], [0], [0], [1], [0, 0, 1, 1], [], []>} : vector<8x8xf32>, vector<8x32xf32>, vector<8x32xf32> -> vector<8x32xf32>
    %335 = arith.addf %296, %334 : vector<8x32xf32>
    %c15 = arith.constant 15 : index
    %c0_215 = arith.constant 0 : index
    %c0_216 = arith.constant 0 : index
    %336 = vector.load %arg4[%c15, %c0_215, %c0_216] : memref<24x32x8xf32, #tpu.memory_space<vmem>>, vector<1x32x8xf32>
    %337 = vector.shape_cast %336 : vector<1x32x8xf32> to vector<32x8xf32>
    %cst_217 = arith.constant dense<0.000000e+00> : vector<8x8xf32>
    %338 = tpu.matmul %219, %337, %cst_217 {dimension_numbers = #tpu.dot_dimension_numbers<[1], [0], [0], [1], [0, 0, 1, 1], [], []>} : vector<8x32xf32>, vector<32x8xf32>, vector<8x8xf32> -> vector<8x8xf32>
    %c15_218 = arith.constant 15 : index
    %c0_219 = arith.constant 0 : index
    %c0_220 = arith.constant 0 : index
    %339 = vector.load %arg5[%c15_218, %c0_219, %c0_220] : memref<24x1x8xf32, #tpu.memory_space<vmem>>, vector<1x1x8xf32>
    %340 = vector.shape_cast %339 : vector<1x1x8xf32> to vector<1x8xf32>
    %341 = vector.broadcast %340 : vector<1x8xf32> to vector<8x8xf32>
    %342 = arith.addf %338, %341 : vector<8x8xf32>
    %c19 = arith.constant 19 : index
    %c0_221 = arith.constant 0 : index
    %c0_222 = arith.constant 0 : index
    %343 = vector.load %arg4[%c19, %c0_221, %c0_222] : memref<24x32x8xf32, #tpu.memory_space<vmem>>, vector<1x32x8xf32>
    %344 = vector.shape_cast %343 : vector<1x32x8xf32> to vector<32x8xf32>
    %cst_223 = arith.constant dense<0.000000e+00> : vector<16x8xf32>
    %345 = tpu.matmul %3, %344, %cst_223 {dimension_numbers = #tpu.dot_dimension_numbers<[1], [0], [0], [1], [0, 0, 1, 1], [], []>} : vector<16x32xf32>, vector<32x8xf32>, vector<16x8xf32> -> vector<16x8xf32>
    %c19_224 = arith.constant 19 : index
    %c0_225 = arith.constant 0 : index
    %c0_226 = arith.constant 0 : index
    %346 = vector.load %arg5[%c19_224, %c0_225, %c0_226] : memref<24x1x8xf32, #tpu.memory_space<vmem>>, vector<1x1x8xf32>
    %347 = vector.shape_cast %346 : vector<1x1x8xf32> to vector<1x8xf32>
    %348 = vector.broadcast %347 : vector<1x8xf32> to vector<16x8xf32>
    %349 = arith.addf %345, %348 : vector<16x8xf32>
    %c23 = arith.constant 23 : index
    %c0_227 = arith.constant 0 : index
    %c0_228 = arith.constant 0 : index
    %350 = vector.load %arg4[%c23, %c0_227, %c0_228] : memref<24x32x8xf32, #tpu.memory_space<vmem>>, vector<1x32x8xf32>
    %351 = vector.shape_cast %350 : vector<1x32x8xf32> to vector<32x8xf32>
    %cst_229 = arith.constant dense<0.000000e+00> : vector<16x8xf32>
    %352 = tpu.matmul %3, %351, %cst_229 {dimension_numbers = #tpu.dot_dimension_numbers<[1], [0], [0], [1], [0, 0, 1, 1], [], []>} : vector<16x32xf32>, vector<32x8xf32>, vector<16x8xf32> -> vector<16x8xf32>
    %c23_230 = arith.constant 23 : index
    %c0_231 = arith.constant 0 : index
    %c0_232 = arith.constant 0 : index
    %353 = vector.load %arg5[%c23_230, %c0_231, %c0_232] : memref<24x1x8xf32, #tpu.memory_space<vmem>>, vector<1x1x8xf32>
    %354 = vector.shape_cast %353 : vector<1x1x8xf32> to vector<1x8xf32>
    %355 = vector.broadcast %354 : vector<1x8xf32> to vector<16x8xf32>
    %356 = arith.addf %352, %355 : vector<16x8xf32>
    %cst_233 = arith.constant dense<0.000000e+00> : vector<8x16xf32>
    %357 = tpu.matmul %342, %349, %cst_233 {dimension_numbers = #tpu.dot_dimension_numbers<[1], [1], [0], [0], [0, 0, 1, 0], [], []>} : vector<8x8xf32>, vector<16x8xf32>, vector<8x16xf32> -> vector<8x16xf32>
    %358 = vector.broadcast %16 : vector<1x16xf32> to vector<8x16xf32>
    %359 = arith.addf %357, %358 : vector<8x16xf32>
    %cst_234 = arith.constant dense<0xFF800000> : vector<8xf32>
    %360 = vector.multi_reduction <maximumf>, %359, %cst_234 [1] : vector<8x16xf32> to vector<8xf32>
    %361 = vector.shape_cast %360 : vector<8xf32> to vector<8x1xf32>
    %362 = vector.broadcast %361 : vector<8x1xf32> to vector<8x16xf32>
    %363 = arith.subf %359, %362 : vector<8x16xf32>
    %364 = math.exp %363 : vector<8x16xf32>
    %cst_235 = arith.constant dense<0.000000e+00> : vector<8xf32>
    %365 = vector.multi_reduction <add>, %364, %cst_235 [1] : vector<8x16xf32> to vector<8xf32>
    %366 = vector.shape_cast %365 : vector<8xf32> to vector<8x1xf32>
    %367 = tpu.reciprocal %366 {approx = true} : vector<8x1xf32> -> vector<8x1xf32>
    %368 = vector.broadcast %367 : vector<8x1xf32> to vector<8x16xf32>
    %369 = arith.mulf %364, %368 : vector<8x16xf32>
    %cst_236 = arith.constant dense<0.000000e+00> : vector<8x8xf32>
    %370 = tpu.matmul %369, %356, %cst_236 {dimension_numbers = #tpu.dot_dimension_numbers<[1], [0], [0], [1], [0, 0, 1, 1], [], []>} : vector<8x16xf32>, vector<16x8xf32>, vector<8x8xf32> -> vector<8x8xf32>
    %c7_237 = arith.constant 7 : index
    %c0_238 = arith.constant 0 : index
    %c0_239 = arith.constant 0 : index
    %371 = vector.load %arg6[%c7_237, %c0_238, %c0_239] : memref<8x8x32xf32, #tpu.memory_space<vmem>>, vector<1x8x32xf32>
    %372 = vector.shape_cast %371 : vector<1x8x32xf32> to vector<8x32xf32>
    %cst_240 = arith.constant dense<0.000000e+00> : vector<8x32xf32>
    %373 = tpu.matmul %370, %372, %cst_240 {dimension_numbers = #tpu.dot_dimension_numbers<[1], [0], [0], [1], [0, 0, 1, 1], [], []>} : vector<8x8xf32>, vector<8x32xf32>, vector<8x32xf32> -> vector<8x32xf32>
    %374 = arith.addf %335, %373 : vector<8x32xf32>
    %375 = arith.addf %195, %374 : vector<8x32xf32>
    %c5_241 = arith.constant 5 : index
    %c0_242 = arith.constant 0 : index
    %376 = vector.load %arg8[%c5_241, %c0_242] : memref<10x64xf32, #tpu.memory_space<vmem>>, vector<1x32xf32>
    %377 = vector.broadcast %376 : vector<1x32xf32> to vector<8x32xf32>
    %378 = arith.addf %375, %377 : vector<8x32xf32>
    %c6_243 = arith.constant 6 : index
    %c0_244 = arith.constant 0 : index
    %379 = vector.load %arg8[%c6_243, %c0_244] : memref<10x64xf32, #tpu.memory_space<vmem>>, vector<1x32xf32>
    %c7_245 = arith.constant 7 : index
    %c0_246 = arith.constant 0 : index
    %380 = vector.load %arg8[%c7_245, %c0_246] : memref<10x64xf32, #tpu.memory_space<vmem>>, vector<1x32xf32>
    %cst_247 = arith.constant dense<0.000000e+00> : vector<8xf32>
    %381 = vector.multi_reduction <add>, %378, %cst_247 [1] : vector<8x32xf32> to vector<8xf32>
    %382 = vector.shape_cast %381 : vector<8xf32> to vector<8x1xf32>
    %cst_248 = arith.constant 3.200000e+01 : f32
    %383 = vector.broadcast %cst_248 : f32 to vector<8x1xf32>
    %384 = arith.divf %382, %383 : vector<8x1xf32>
    %385 = vector.broadcast %384 : vector<8x1xf32> to vector<8x32xf32>
    %386 = arith.subf %378, %385 : vector<8x32xf32>
    %387 = arith.mulf %386, %386 : vector<8x32xf32>
    %cst_249 = arith.constant dense<0.000000e+00> : vector<8xf32>
    %388 = vector.multi_reduction <add>, %387, %cst_249 [1] : vector<8x32xf32> to vector<8xf32>
    %389 = vector.shape_cast %388 : vector<8xf32> to vector<8x1xf32>
    %cst_250 = arith.constant 3.200000e+01 : f32
    %390 = vector.broadcast %cst_250 : f32 to vector<8x1xf32>
    %391 = arith.divf %389, %390 : vector<8x1xf32>
    %392 = vector.broadcast %384 : vector<8x1xf32> to vector<8x32xf32>
    %393 = arith.subf %378, %392 : vector<8x32xf32>
    %cst_251 = arith.constant 9.99999997E-7 : f32
    %394 = vector.broadcast %cst_251 : f32 to vector<8x1xf32>
    %395 = arith.addf %391, %394 : vector<8x1xf32>
    %396 = math.rsqrt %395 : vector<8x1xf32>
    %397 = vector.broadcast %396 : vector<8x1xf32> to vector<8x32xf32>
    %398 = arith.mulf %393, %397 : vector<8x32xf32>
    %399 = vector.broadcast %379 : vector<1x32xf32> to vector<8x32xf32>
    %400 = arith.mulf %398, %399 : vector<8x32xf32>
    %401 = vector.broadcast %380 : vector<1x32xf32> to vector<8x32xf32>
    %402 = arith.addf %400, %401 : vector<8x32xf32>
    %c0_252 = arith.constant 0 : index
    %c0_253 = arith.constant 0 : index
    %403 = vector.load %arg7[%c0_252, %c0_253] : memref<96x64xf32, #tpu.memory_space<vmem>>, vector<32x64xf32>
    %c32 = arith.constant 32 : index
    %c0_254 = arith.constant 0 : index
    %404 = vector.load %arg7[%c32, %c0_254] : memref<96x64xf32, #tpu.memory_space<vmem>>, vector<64x32xf32>
    %cst_255 = arith.constant dense<0.000000e+00> : vector<8x64xf32>
    %405 = tpu.matmul %402, %403, %cst_255 {dimension_numbers = #tpu.dot_dimension_numbers<[1], [0], [0], [1], [0, 0, 1, 1], [], []>} : vector<8x32xf32>, vector<32x64xf32>, vector<8x64xf32> -> vector<8x64xf32>
    %c9_256 = arith.constant 9 : index
    %c0_257 = arith.constant 0 : index
    %406 = vector.load %arg8[%c9_256, %c0_257] : memref<10x64xf32, #tpu.memory_space<vmem>>, vector<1x64xf32>
    %407 = vector.broadcast %406 : vector<1x64xf32> to vector<8x64xf32>
    %408 = arith.addf %405, %407 : vector<8x64xf32>
    %cst_258 = arith.constant 0.000000e+00 : f32
    %409 = vector.broadcast %cst_258 : f32 to vector<8x64xf32>
    %410 = arith.maximumf %408, %409 : vector<8x64xf32>
    %cst_259 = arith.constant dense<0.000000e+00> : vector<8x32xf32>
    %411 = tpu.matmul %410, %404, %cst_259 {dimension_numbers = #tpu.dot_dimension_numbers<[1], [0], [0], [1], [0, 0, 1, 1], [], []>} : vector<8x64xf32>, vector<64x32xf32>, vector<8x32xf32> -> vector<8x32xf32>
    %c8_260 = arith.constant 8 : index
    %c0_261 = arith.constant 0 : index
    %412 = vector.load %arg8[%c8_260, %c0_261] : memref<10x64xf32, #tpu.memory_space<vmem>>, vector<1x32xf32>
    %413 = vector.broadcast %412 : vector<1x32xf32> to vector<8x32xf32>
    %414 = arith.addf %411, %413 : vector<8x32xf32>
    %415 = arith.addf %378, %414 : vector<8x32xf32>
    %c0_262 = arith.constant 0 : index
    %c0_263 = arith.constant 0 : index
    %c0_264 = arith.constant 0 : index
    %416 = vector.load %arg9[%c0_262, %c0_263, %c0_264] : memref<1x8x32xf32, #tpu.memory_space<vmem>>, vector<1x8x32xf32>
    %417 = vector.shape_cast %416 : vector<1x8x32xf32> to vector<8x32xf32>
    %418 = vector.shape_cast %415 : vector<8x32xf32> to vector<1x8x32xf32>
    tpu.vector_store %arg9[%c0_262, %c0_263, %c0_264], %418 {strides = array<i32>} : memref<1x8x32xf32, #tpu.memory_space<vmem>>, vector<1x8x32xf32>,
    return
  }
  func.func @transform_0(%arg0: i32) -> (i32, i32, i32) {
    %c0_i32 = arith.constant 0 : i32
    %c0_i32_0 = arith.constant 0 : i32
    %c0_i32_1 = arith.constant 0 : i32
    return %arg0, %c0_i32, %c0_i32_0 : i32, i32, i32
  }
  func.func @transform_1(%arg0: i32) -> (i32, i32, i32) {
    %c0_i32 = arith.constant 0 : i32
    %c0_i32_0 = arith.constant 0 : i32
    %c0_i32_1 = arith.constant 0 : i32
    return %arg0, %c0_i32, %c0_i32_0 : i32, i32, i32
  }
  func.func @transform_2(%arg0: i32) -> (i32, i32, i32) {
    %c0_i32 = arith.constant 0 : i32
    %c0_i32_0 = arith.constant 0 : i32
    %c0_i32_1 = arith.constant 0 : i32
    return %arg0, %c0_i32, %c0_i32_0 : i32, i32, i32
  }
  func.func @transform_3(%arg0: i32) -> (i32, i32, i32) {
    %c0_i32 = arith.constant 0 : i32
    %c0_i32_0 = arith.constant 0 : i32
    %c0_i32_1 = arith.constant 0 : i32
    %c0_i32_2 = arith.constant 0 : i32
    return %c0_i32, %c0_i32_0, %c0_i32_1 : i32, i32, i32
  }
  func.func @transform_4(%arg0: i32) -> (i32, i32, i32) {
    %c0_i32 = arith.constant 0 : i32
    %c0_i32_0 = arith.constant 0 : i32
    %c0_i32_1 = arith.constant 0 : i32
    %c0_i32_2 = arith.constant 0 : i32
    return %c0_i32, %c0_i32_0, %c0_i32_1 : i32, i32, i32
  }
  func.func @transform_5(%arg0: i32) -> (i32, i32, i32) {
    %c0_i32 = arith.constant 0 : i32
    %c0_i32_0 = arith.constant 0 : i32
    %c0_i32_1 = arith.constant 0 : i32
    %c0_i32_2 = arith.constant 0 : i32
    return %c0_i32, %c0_i32_0, %c0_i32_1 : i32, i32, i32
  }
  func.func @transform_6(%arg0: i32) -> (i32, i32) {
    %c0_i32 = arith.constant 0 : i32
    %c0_i32_0 = arith.constant 0 : i32
    %c0_i32_1 = arith.constant 0 : i32
    return %c0_i32, %c0_i32_0 : i32, i32
  }
  func.func @transform_7(%arg0: i32) -> (i32, i32) {
    %c0_i32 = arith.constant 0 : i32
    %c0_i32_0 = arith.constant 0 : i32
    %c0_i32_1 = arith.constant 0 : i32
    return %c0_i32, %c0_i32_0 : i32, i32
  }
  func.func @transform_8(%arg0: i32) -> (i32, i32, i32) {
    %c0_i32 = arith.constant 0 : i32
    %c0_i32_0 = arith.constant 0 : i32
    %c0_i32_1 = arith.constant 0 : i32
    return %arg0, %c0_i32, %c0_i32_0 : i32, i32, i32
  }
}

</mosaic_0001>

<bundles_post_ra>
// kernel: tpu_custom_call.1
= control target key start
LH: loop header
LB: loop body
LE: loop exit
PB: predicated region body
PF: predicated region fallthrough
CT: control target
= control target key end

     0   :  { %13 = vsyncpa [#allocation3], 0  ;;  %s3228_s0 = inlined_call_operand.vmem [shape: f32[2,8,32], index: 0, kind: input, shape index: {}]   ;;  %s3229_s1 = inlined_call_operand.vmem [shape: f32[2,16,32], index: 1, kind: input, shape index: {}]   ;;  %s3230_s2 = inlined_call_operand.vmem [shape: f32[2,8,8], index: 2, kind: input, shape index: {}]   ;;  %s3231_s3 = inlined_call_operand.vmem [shape: f32[24,32,8], index: 3, kind: input, shape index: {}]   ;;  %s3232_s4 = inlined_call_operand.vmem [shape: f32[24,1,8], index: 4, kind: input, shape index: {}]   ;;  %s3233_s5 = inlined_call_operand.vmem [shape: f32[8,8,32], index: 5, kind: input, shape index: {}]   ;;  %s3234_s6 = inlined_call_operand.vmem [shape: f32[96,64], index: 6, kind: input, shape index: {}]   ;;  %s3235_s7 = inlined_call_operand.vmem [shape: f32[10,64], index: 7, kind: input, shape index: {}]   ;;  %s3236_s8 = inlined_call_operand.hbm [shape: f32[2,8,32], index: 8, kind: output, shape index: {}]  }
   0x1   :  { %15 = vsyncpa [#allocation3 + $0x1], 0  ;;  %s2496_s27 = smov 0   ;;  %s2498_s28 = smov 0  }
   0x2   :  { %s2500_s29 = smov 0   ;;  %s2502_s30 = smov 0  }
   0x3 LB: > { %s2517_s9 = sadd.s32 4294967295, %s2447_s30   ;;  %s2064_s10 = sadd.s32 4294967294, %s2447_s30   ;;  %s2447_s30 = sphi %s2502_s30, %s3242_s30   ;;  %s2443_s29 = sphi %s2500_s29, %s3241_s29   ;;  %s2439_s28 = sphi %s2498_s28, %s3240_s28   ;;  %s2435_s27 = sphi %s2496_s27, %s3239_s27  }
   0x4   : > { %s2521_s11 = sadd.s32 1, %s2447_s30   ;;  %s211_s12 = sadd.s32 1, %s2443_s29 }
   0x5   : > { %s208_s13 = ssub.s32 %s2447_s30, %s2521_s11  ;;  %p221_p0 = scmp.ne.s32.totalorder %s2443_s29, %s2439_s28 }
   0x6   : > { %p209_p1 = scmp.eq.s32.totalorder %s208_s13, 0  ;;  %p222_p2 = scmp.eq.s32.totalorder %s2517_s9, 1 }
   0x7   : > { %p227_p3 = scmp.ne.s32.totalorder %s2439_s28, %s2435_s27  ;;  %p228_p4 = scmp.eq.s32.totalorder %s2064_s10, 1 }
   0x8   : > { %s2532_s14 = scalar_select %p209_p1, %s2443_s29, %s211_s12  }
   0x9   : > { %p2534_p5 = por %p222_p2, %p221_p0  ;;  %p2538_p6 = por %p228_p4, %p227_p3 }
   0xa   : > { %p2067_p7 = scmp.ge.s32.totalorder %s2447_s30, 1  ;;  %p283_p8 = scmp.lt.s32.totalorder %s2447_s30, 3 }
   0xc   : > { %p284_p9 = pnand %p2067_p7, %p283_p8 }
   0xd   : > { %p325_p10 = scmp.lt.s32.totalorder (!%p284_p9), %s2517_s9, 1 }
   0xe   : > { %287 = sbr.rel (%p284_p9) target bundleno = 5590 (0x15d6), region = 52 }
  0x13   : > { %s2546_s17 = scalar_select %p325_p10, %s2517_s9, 1  ;;  %vm350_vm0 = vcmask 261120   ;;  %v2449_v2 = vmov 32.0   ;;  %v387_v14 = vld [vmem:[%s3231_s3 + $0x18] sm:$0xff]  ;;  %v386_v17 = vld [vmem:[%s3231_s3 + $0x10] sm:$0xff]  ;;  %v385_v20 = vld [vmem:[%s3231_s3 + $0x8] sm:$0xff] }
  0x14   : > { %2345 = vrcp.f32 %v2449_v2  ;;  %v2077_v15 = vld [vmem:[%s3231_s3 + $0x98] sm:$0xff]  ;;  %407 = vmatpush.msra.mxu0 %v387_v14  ;;  %v2076_v18 = vld [vmem:[%s3231_s3 + $0x90] sm:$0xff]  ;;  %v2075_v21 = vld [vmem:[%s3231_s3 + $0x88] sm:$0xff]  ;;  %vm475_vm5 = vcmask 64512   ;;  %vm1253_vm11 = vcmask 130048   ;;  %vm1939_vm15 = vcmask 523264  }
  0x15   : > { %s2069_s18 = sshll.u32 %s2546_s17, 3  ;;  %v2083_v16 = vld [vmem:[%s3231_s3 + $0x118] sm:$0xff]  ;;  %437 = vmatpush.msra.mxu1 %v2077_v15  ;;  %v2082_v19 = vld [vmem:[%s3231_s3 + $0x110] sm:$0xff]  ;;  %v2081_v22 = vld [vmem:[%s3231_s3 + $0x108] sm:$0xff] }
  0x16   : > { %s328_s21 = scalar_lea.vmem %s3228_s0, %s2069_s18  ;;  %467 = vmatpush.msra.mxu2 %v2083_v16  ;;  %408 = vmatpush.msra.mxu0 %v386_v17  ;;  %v384_v23 = vld [vmem:[%s3231_s3] sm:$0xff]  ;;  %v2092_v26 = vld [vmem:[%s3231_s3 + $0x38] sm:$0xff]  ;;  %v2091_v29 = vld [vmem:[%s3231_s3 + $0x30] sm:$0xff]  ;;  %s337_s20 = scalar_lea.vmem %s3230_s2, %s2069_s18 }
  0x17   : > { %v2554_v0 = vld [vmem:[%s328_s21] sm:$0xff]  ;;  %438 = vmatpush.msra.mxu1 %v2076_v18  ;;  %v2098_v27 = vld [vmem:[%s3231_s3 + $0xb8] sm:$0xff]  ;;  %v2097_v30 = vld [vmem:[%s3231_s3 + $0xb0] sm:$0xff]  ;;  %s2269_s18 = sshll.u32 %s2546_s17, 4  ;;  %s2266_s21 = sshll.u32 %s2517_s9, 3 }
  0x18   : > { %v351_v1 = vsel %vm350_vm0, %v2554_v0, 0.0  ;;  %468 = vmatpush.msra.mxu2 %v2082_v19  ;;  %409 = vmatpush.msra.mxu0 %v385_v20  ;;  %v2074_v24 = vld [vmem:[%s3231_s3 + $0x80] sm:$0xff]  ;;  %v2104_v28 = vld [vmem:[%s3231_s3 + $0x138] sm:$0xff]  ;;  %v2103_v31 = vld [vmem:[%s3231_s3 + $0x130] sm:$0xff]  ;;  %s333_s25 = scalar_lea.vmem %s3229_s1, %s2269_s18 }
  0x19   : > { %352 = vadd.xlane.f32.xlu0 %v351_v1  ;;  %439 = vmatpush.msra.mxu1 %v2075_v21  ;;  %v2080_v25 = vld [vmem:[%s3231_s3 + $0x100] sm:$0xff]  ;;  %v2090_v33 = vld [vmem:[%s3231_s3 + $0x28] sm:$0xff]  ;;  %v2116_v20 = vld [vmem:[%s3231_s3 + $0x58] sm:$0xff] }
  0x1a   : > { %v2346_v3 = vpop.eup %2345  ;;  %469 = vmatpush.msra.mxu2 %v2081_v22  ;;  %410 = vmatpush.msra.mxu0 %v384_v23  ;;  %v2096_v34 = vld [vmem:[%s3231_s3 + $0xa8] sm:$0xff]  ;;  %v2089_v37 = vld [vmem:[%s3231_s3 + $0x20] sm:$0xff]  ;;  %v2115_v21 = vld [vmem:[%s3231_s3 + $0x50] sm:$0xff] }
  0x1b   : > { %v355_v4 = vmul.f32 32.0, %v2346_v3  ;;  %vm359_vm1 = vweird.f32 %v2346_v3  ;;  %440 = vmatpush.msra.mxu1 %v2074_v24  ;;  %v2102_v36 = vld [vmem:[%s3231_s3 + $0x128] sm:$0xff]  ;;  %v2095_v38 = vld [vmem:[%s3231_s3 + $0xa0] sm:$0xff] }
  0x1c   : > { %470 = vmatpush.msra.mxu2 %v2080_v25  ;;  %559 = vmatpush.msrb.mxu0 %v2092_v26  ;;  %v2101_v40 = vld [vmem:[%s3231_s3 + $0x120] sm:$0xff]  ;;  %v2315_v59 = vld [vmem:[%s3232_s4 + $0x8] ss:$0 sm:$0xff]  ;;  %v2318_v2 = vld [vmem:[%s3232_s4 + $0x9] ss:$0 sm:$0xff] }
  0x1d   : > { %v356_v5 = vsub.f32 1.0, %v355_v4  ;;  %589 = vmatpush.msrb.mxu1 %v2098_v27  ;;  %v2311_v47 = vld [vmem:[%s3235_s7] ss:$0 sm:$0xff]  ;;  %v2312_v49 = vld [vmem:[%s3235_s7 + $0x1] ss:$0 sm:$0xff]  ;;  %v2114_v23 = vld [vmem:[%s3231_s3 + $0x48] sm:$0xff] }
  0x1e   : > { %619 = vmatpush.msrb.mxu2 %v2104_v28  ;;  %560 = vmatpush.msrb.mxu0 %v2091_v29  ;;  %v2314_v53 = vld [vmem:[%s3232_s4 + $0x4] ss:$0 sm:$0xff]  ;;  %v2313_v54 = vld [vmem:[%s3232_s4] ss:$0 sm:$0xff]  ;;  %v2317_v60 = vld [vmem:[%s3232_s4 + $0x5] ss:$0 sm:$0xff] }
  0x1f   : > { %v357_v6 = vmul.f32 %v2346_v3, %v356_v5  ;;  %590 = vmatpush.msrb.mxu1 %v2097_v30  ;;  %v341_v5 = vld [vmem:[%s337_s20] sm:$0xff]  ;;  %s322_s20 = sand.u32 1, %s2439_s28  }
  0x20   : > { %620 = vmatpush.msrb.mxu2 %v2103_v31  ;;  %561 = vmatpush.msrb.mxu0 %v2090_v33  ;;  %vm342_vm6 = vcmp.gt.f32.partialorder %v341_v5, 0.0  ;;  %v2316_v22 = vld [vmem:[%s3232_s4 + $0x1] ss:$0 sm:$0xff]  ;;  %s2068_s18 = sshll.u32 %s322_s20, 3  ;;  %s1966_s9 = scalar_lea.sflag [#allocation3], %s322_s20 }
  0x21   : > { %v358_v7 = vadd.f32 %v2346_v3, %v357_v6  ;;  %591 = vmatpush.msrb.mxu1 %v2096_v34  ;;  %v2450_v6 = vmov -1e+09   ;;  %v2113_v25 = vld [vmem:[%s3231_s3 + $0x40] sm:$0xff]  ;;  %s324_s10 = scalar_lea.vmem [#allocation2], %s2068_s18  ;;  %s2405_s18 = scalar_lea.hbm %s3236_s8, 16 }
  0x22   : > { %621 = vmatpush.msrb.mxu2 %v2102_v36  ;;  %562 = vmatpush.msrb.mxu0 %v2089_v37  ;;  %v536_v27 = vld [vmem:[%s3233_s5] sm:$0xff]  ;;  %v2122_v37 = vld [vmem:[%s3231_s3 + $0xd8] sm:$0xff]  ;;  %s1978_s12 = sshll.u32 %s324_s10, 4  ;;  %s1979_s12 = int_to_ptr.vmem [resolvable:$true] %s1978_s12 }
  0x23   : > { %v2558_v8 = vsel %vm359_vm1, %v2346_v3, %v358_v7  ;;  %592 = vmatpush.msrb.mxu1 %v2095_v38  ;;  %v2685_v7 = vsel %vm342_vm6, 0.0, %v2450_v6  ;;  %v2121_v38 = vld [vmem:[%s3231_s3 + $0xd0] sm:$0xff] }
  0x24   : > { %622 = vmatpush.msrb.mxu2 %v2101_v40  ;;  %v2119_v40 = vld [vmem:[%s3231_s3 + $0xc0] sm:$0xff] }
  0x8c   : > { %v353_v9 = vpop.xlane.xlu0 %352 }
  0x8d   : > { %v361_v10 = vmul.f32 %v2558_v8, %v353_v9 }
  0x8f   : > { %v2562_v11 = vsub.f32 %v2554_v0, %v361_v10 }
  0x91   : > { %v363_v12 = vmul.f32 %v2562_v11, %v2562_v11 }
  0x93   : > { %v364_v13 = vsel %vm350_vm0, %v363_v12, 0.0 }
  0x94   : > { %365 = vadd.xlane.f32.xlu0 %v364_v13 }
 0x107   : > { %v366_v32 = vpop.xlane.xlu0 %365 }
 0x108   : > { %v367_v35 = vmul.f32 %v366_v32, %v2558_v8 }
 0x10a   : > { %v368_v39 = vadd.f32 1e-06, %v367_v35 }
 0x10c   : > { %2347 = vrsqrt.f32 %v368_v39  ;;  %vm375_vm3 = vweird.f32 %v368_v39 }
 0x112   : > { %v2348_v41 = vpop.eup %2347 }
 0x113   : > { %v370_v42 = vmul.f32 %v2348_v41, %v368_v39  ;;  %vm376_vm2 = vweird.f32 %v2348_v41  ;;  %v2120_v39 = vld [vmem:[%s3231_s3 + $0xc8] sm:$0xff] }
 0x114   : > { %vm377_vm4 = vmor %vm375_vm3, %vm376_vm2 }
 0x115   : > { %v371_v43 = vmul.f32 %v2348_v41, %v370_v42 }
 0x117   : > { %v372_v44 = vmul.f32 0.5, %v371_v43 }
 0x119   : > { %v373_v45 = vsub.f32 1.5, %v372_v44  ;;  %v2110_v44 = vld [vmem:[%s3233_s5 + $0x8] sm:$0xff] }
 0x11b   : > { %v374_v46 = vmul.f32 %v2348_v41, %v373_v45  ;;  %v2128_v45 = vld [vmem:[%s3231_s3 + $0x158] sm:$0xff] }
 0x11d   : > { %v378_v48 = vsel %vm377_vm4, %v2348_v41, %v374_v46  ;;  %v2127_v46 = vld [vmem:[%s3231_s3 + $0x150] sm:$0xff] }
 0x11e   : > { %v379_v50 = vmul.f32 %v378_v48, %v2562_v11  ;;  %v2125_v48 = vld [vmem:[%s3231_s3 + $0x140] sm:$0xff] }
 0x120   : > { %v381_v51 = vmul.f32 %v2311_v47, %v379_v50  ;;  %v2126_v47 = vld [vmem:[%s3231_s3 + $0x148] sm:$0xff] }
 0x122   : > { %v2647_v52 = vadd.f32 %v2312_v49, %v381_v51  ;;  %v2139_v49 = vld [vmem:[%s3231_s3 + $0x78] sm:$0xff]  ;;  %v2138_v51 = vld [vmem:[%s3231_s3 + $0x70] sm:$0xff] }
 0x124   : > { %2073 = vmatmul.msk.f32.vlgmr.msra.gmra.mxu0 %vm350_vm0, %v2647_v52  ;;  %2079 = vmatmul.msk.f32.vlgmr.msra.gmra.mxu1 %vm350_vm0, %v2647_v52 }
 0x125   : > { %2085 = vmatmul.msk.f32.vlgmr.msra.gmra.mxu2 %vm350_vm0, %v2647_v52  ;;  %707 = vmatpush.msra.mxu1 %v2110_v44 }
 0x126   : > { %730 = vmatpush.msra.mxu2 %v536_v27 }
 0x12c   : > { %2094 = vmatmul.msk.f32.vlgmr.msrb.gmra.mxu0 %vm350_vm0, %v2647_v52  ;;  %2100 = vmatmul.msk.f32.vlgmr.msrb.gmra.mxu1 %vm350_vm0, %v2647_v52 }
 0x12d   : > { %2106 = vmatmul.msk.f32.vlgmr.msrb.gmra.mxu2 %vm350_vm0, %v2647_v52  ;;  %817 = vmatpush.msrb.mxu1 %v2128_v45 }
 0x12f   : > { %818 = vmatpush.msrb.mxu1 %v2127_v46 }
 0x131   : > { %819 = vmatpush.msrb.mxu1 %v2126_v47 }
 0x133   : > { %820 = vmatpush.msrb.mxu1 %v2125_v48 }
 0x1a1   : > { %v442_v55 = vpop.f32.mrf.mxu1  ;;  %v412_v56 = vpop.f32.mrf.mxu0 }
 0x1a2   : > { %v443_v57 = vadd.f32 %v2314_v53, %v442_v55  ;;  %v413_v58 = vadd.f32 %v2313_v54, %v412_v56  ;;  %v2137_v53 = vld [vmem:[%s3231_s3 + $0x68] sm:$0xff]  ;;  %v2320_v54 = vld [vmem:[%s3232_s4 + $0x6] ss:$0 sm:$0xff]  ;;  %v2319_v56 = vld [vmem:[%s3232_s4 + $0x2] ss:$0 sm:$0xff] }
 0x1a3   : > { %v2136_v55 = vld [vmem:[%s3231_s3 + $0x60] sm:$0xff] }
 0x1a4   : > { %2086 = vmatpush.xpose.msk.msra.mxu3 %vm475_vm5, %v443_v57 }
 0x1a7   : > { %2087 = vmatmul.msk.f32.vlgmr.msra.gmra.mxu3 %vm475_vm5, %v413_v58 }
 0x1a8   : > { %v472_v61 = vpop.f32.mrf.mxu2 }
 0x1a9   : > { %v473_v62 = vadd.f32 %v2315_v59, %v472_v61  ;;  %v594_v63 = vpop.f32.mrf.mxu1  ;;  %v564_v24 = vpop.f32.mrf.mxu0 }
 0x1aa   : > { %v595_v1 = vadd.f32 %v2317_v60, %v594_v63  ;;  %v565_v26 = vadd.f32 %v2316_v22, %v564_v24  ;;  %v2145_v60 = vld [vmem:[%s3231_s3 + $0xf8] sm:$0xff]  ;;  %v2143_v63 = vld [vmem:[%s3231_s3 + $0xe8] sm:$0xff]  ;;  %v2150_v24 = vld [vmem:[%s3231_s3 + $0x170] sm:$0xff] }
 0x1ab   : > { %531 = vmatpush.msrb.mxu3 %v473_v62  ;;  %v2144_v62 = vld [vmem:[%s3231_s3 + $0xf0] sm:$0xff] }
 0x1ad   : > { %2107 = vmatpush.xpose.msk.msra.mxu3 %vm475_vm5, %v595_v1  ;;  %v2142_v1 = vld [vmem:[%s3231_s3 + $0xe0] sm:$0xff] }
 0x1b0   : > { %v624_v3 = vpop.f32.mrf.mxu2 }
 0x1b1   : > { %v625_v4 = vadd.f32 %v2318_v2, %v624_v3  ;;  %v2134_v2 = vld [vmem:[%s3233_s5 + $0x10] sm:$0xff] }
 0x1b3   : > { %682 = vmatpush.msra.mxu0 %v625_v4 }
 0x1b5   : > { %787 = vmatpush.msrb.mxu0 %v2122_v37 }
 0x1b7   : > { %788 = vmatpush.msrb.mxu0 %v2121_v38 }
 0x1b9   : > { %789 = vmatpush.msrb.mxu0 %v2120_v39 }
 0x1bb   : > { %790 = vmatpush.msrb.mxu0 %v2119_v40 }
 0x22a   : > { %v499_v9 = vpop.f32.mrf.mxu3 }
 0x22b   : > { %v500_v10 = vadd.f32 %v499_v9, %v2685_v7  ;;  %v2321_v9 = vld [vmem:[%s3232_s4 + $0xa] ss:$0 sm:$0xff] }
 0x22d   : > { %v502_v11 = vsel %vm475_vm5, %v500_v10, -inf }
 0x22e   : > { %503 = vmax.xlane.f32.xlu1 %v502_v11 }
 0x2a1   : > { %v504_v12 = vpop.xlane.xlu1 %503 }
 0x2a2   : > { %v505_v13 = vsub.f32 %v500_v10, %v504_v12 }
 0x2a4   : > { %v506_v14 = vmul.f32 1.442695, %v505_v13 }
 0x2a6   : > { %2349 = vpow2.f32 %v506_v14 }
 0x2ac   : > { %v2350_v15 = vpop.eup %2349 }
 0x2ad   : > { %v508_v16 = vsel %vm475_vm5, %v2350_v15, 0.0 }
 0x2ae   : > { %509 = vadd.xlane.f32.xlu1 %v508_v16 }
 0x321   : > { %v510_v17 = vpop.xlane.xlu1 %509 }
 0x322   : > { %2351 = vrcp.f32 %v510_v17 }
 0x328   : > { %v2352_v18 = vpop.eup %2351 }
 0x329   : > { %v512_v19 = vmul.f32 %v2352_v18, %v2350_v15  ;;  %v2323_v15 = vld [vmem:[%s3232_s4 + $0x7] ss:$0 sm:$0xff] }
 0x32b   : > { %2088 = vmatmul.msk.f32.vlgmr.msrb.gmra.mxu3 %vm475_vm5, %v512_v19 }
 0x32c   : > { %757 = vmatpush.msrb.mxu3 %v2116_v20 }
 0x32e   : > { %758 = vmatpush.msrb.mxu3 %v2115_v21 }
 0x330   : > { %759 = vmatpush.msrb.mxu3 %v2114_v23  ;;  %v2151_v23 = vld [vmem:[%s3231_s3 + $0x178] sm:$0xff] }
 0x332   : > { %760 = vmatpush.msrb.mxu3 %v2113_v25  ;;  %v2149_v25 = vld [vmem:[%s3231_s3 + $0x168] sm:$0xff] }
 0x333   : > { %2108 = vmatmul.msk.f32.vlgmr.msra.gmra.mxu3 %vm475_vm5, %v565_v26  ;;  %v2148_v26 = vld [vmem:[%s3231_s3 + $0x160] sm:$0xff] }
 0x33b   : > { %2118 = vmatmul.msk.f32.vlgmr.msrb.gmra.mxu3 %vm350_vm0, %v2647_v52 }
 0x3ae   : > { %v533_v28 = vpop.f32.mrf.mxu3 }
 0x3af   : > { %2112 = vmatmul.msk.f32.vlgmr.msra.gmra.mxu2 %vm475_vm5, %v533_v28 }
 0x3b6   : > { %v650_v29 = vpop.f32.mrf.mxu3 }
 0x3b7   : > { %v651_v30 = vadd.f32 %v650_v29, %v2685_v7 }
 0x3b9   : > { %v653_v31 = vsel %vm475_vm5, %v651_v30, -inf }
 0x3ba   : > { %654 = vmax.xlane.f32.xlu2 %v653_v31  ;;  %v2322_v31 = vld [vmem:[%s3232_s4 + $0x3] ss:$0 sm:$0xff] }
 0x3be   : > { %v762_v58 = vpop.f32.mrf.mxu3 }
 0x3bf   : > { %v763_v61 = vadd.f32 %v2319_v56, %v762_v58 }
 0x42d   : > { %v655_v32 = vpop.xlane.xlu2 %654 }
 0x42e   : > { %v656_v33 = vsub.f32 %v651_v30, %v655_v32 }
 0x430   : > { %v657_v34 = vmul.f32 1.442695, %v656_v33  ;;  %v2324_v33 = vld [vmem:[%s3232_s4 + $0xb] ss:$0 sm:$0xff] }
 0x432   : > { %2353 = vpow2.f32 %v657_v34  ;;  %v732_v3 = vpop.f32.mrf.mxu2 }
 0x438   : > { %v2354_v35 = vpop.eup %2353 }
 0x439   : > { %v659_v36 = vsel %vm475_vm5, %v2354_v35, 0.0 }
 0x43a   : > { %660 = vadd.xlane.f32.xlu2 %v659_v36 }
 0x4ad   : > { %v661_v41 = vpop.xlane.xlu2 %660 }
 0x4ae   : > { %2355 = vrcp.f32 %v661_v41 }
 0x4b4   : > { %v2356_v42 = vpop.eup %2355 }
 0x4b5   : > { %v663_v43 = vmul.f32 %v2356_v42, %v2354_v35 }
 0x4b7   : > { %2109 = vmatmul.msk.f32.vlgmr.msra.gmra.mxu0 %vm475_vm5, %v663_v43 }
 0x4b8   : > { %905 = vmatpush.msra.mxu0 %v2134_v2  ;;  %v2165_v2 = vld [vmem:[%s3231_s3 + $0x200] sm:$0xff] }
 0x4bf   : > { %2124 = vmatmul.msk.f32.vlgmr.msrb.gmra.mxu0 %vm350_vm0, %v2647_v52 }
 0x534   : > { %v684_v50 = vpop.f32.mrf.mxu0 }
 0x535   : > { %2111 = vmatmul.msk.f32.vlgmr.msra.gmra.mxu1 %vm475_vm5, %v684_v50 }
 0x536   : > { %933 = vmatpush.msra.mxu1 %v2139_v49 }
 0x538   : > { %934 = vmatpush.msra.mxu1 %v2138_v51 }
 0x53a   : > { %935 = vmatpush.msra.mxu1 %v2137_v53  ;;  %v2325_v53 = vld [vmem:[%s3235_s7 + $0x2] ss:$0 sm:$0xff] }
 0x53c   : > { %v792_v57 = vpop.f32.mrf.mxu0  ;;  %936 = vmatpush.msra.mxu1 %v2136_v55 }
 0x53d   : > { %v793_v59 = vadd.f32 %v2320_v54, %v792_v57  ;;  %2130 = vmatmul.msk.f32.vlgmr.msrb.gmra.mxu1 %vm350_vm0, %v2647_v52 }
 0x53f   : > { %2131 = vmatpush.xpose.msk.msrb.mxu2 %vm475_vm5, %v793_v59 }
 0x542   : > { %2132 = vmatmul.msk.f32.vlgmr.msrb.gmra.mxu2 %vm475_vm5, %v763_v61 }
 0x543   : > { %963 = vmatpush.msra.mxu2 %v2145_v60 }
 0x545   : > { %964 = vmatpush.msra.mxu2 %v2144_v62  ;;  %2141 = vmatmul.msk.f32.vlgmr.msra.gmra.mxu1 %vm350_vm0, %v2647_v52  ;;  %v2167_v62 = vld [vmem:[%s3231_s3 + $0x210] sm:$0xff] }
 0x547   : > { %965 = vmatpush.msra.mxu2 %v2143_v63  ;;  %v2166_v63 = vld [vmem:[%s3231_s3 + $0x208] sm:$0xff] }
 0x549   : > { %966 = vmatpush.msra.mxu2 %v2142_v1  ;;  %v2853_v1 = vld [vmem:[%s333_s25] sm:$0xff] }
 0x54a   : > { %2147 = vmatmul.msk.f32.vlgmr.msra.gmra.mxu2 %vm350_vm0, %v2647_v52 }
 0x5b2   : > { %v709_v4 = vpop.f32.mrf.mxu1 }
 0x5b3   : > { %v733_v5 = vadd.f32 %v732_v3, %v709_v4  ;;  %v2860_v3 = vld [vmem:[%s333_s25 + $0x8] sm:$0xff]  ;;  %v2162_v4 = vld [vmem:[%s3231_s3 + $0x198] sm:$0xff]  ;;  %s1976_s25 = scalar_lea.hbm %s3236_s8, %s2266_s21 }
 0x5b4   : > { %s1980_s13 = sshll.u32 %s1976_s25, 4  ;;  %s1981_s13 = int_to_ptr.hbm [resolvable:$true] %s1980_s13 }
 0x5b5   : > { %s2399_s17 = sshra.s32 %s1981_s13, 4  ;;  %s2400_s17 = int_to_ptr.hbm [resolvable:$true] %s2399_s17 }
 0x5b6   : > { %s2401_s19 = scalar_lea.hbm %s2400_s17, 8  ;;  %p2406_p0 = scmp.lt.s32.totalorder %s2400_s17, %s3236_s8 }
 0x5b7   : > { %p2402_p11 = scmp.ne.s32.totalorder %s2400_s17, %s2401_s19  ;;  %p2407_p1 = scmp.lt.s32.totalorder %s2405_s18, %s2401_s19 }
 0x5b9   : > { %p2403_p12 = pnand %p2402_p11, %p2534_p5  ;;  %p2408_p2 = por %p2407_p1, %p2406_p0 }
 0x5ba   : > { %v822_v10 = vpop.f32.mrf.mxu1 }
 0x5bb   : > { %v823_v11 = vadd.f32 %v2321_v9, %v822_v10  ;;  %v2160_v9 = vld [vmem:[%s3231_s3 + $0x188] sm:$0xff]  ;;  %v2159_v10 = vld [vmem:[%s3231_s3 + $0x180] sm:$0xff]  ;;  %p2404_p13 = pneg %p2403_p12 }
 0x5bd   : > { %880 = vmatpush.msra.mxu3 %v823_v11  ;;  %p2409_p3 = pnand %p2408_p2, %p2404_p13 }
 0x5bf   : > { %993 = vmatpush.msrb.mxu3 %v2151_v23  ;;  %v2327_v23 = vld [vmem:[%s3235_s7 + $0x4] ss:$0 sm:$0xff] }
 0x5c1   : > { %994 = vmatpush.msrb.mxu3 %v2150_v24 }
 0x5c2   : > { %v938_v32 = vpop.f32.mrf.mxu1 }
 0x5c3   : > { %995 = vmatpush.msrb.mxu3 %v2149_v25  ;;  %v939_v34 = vadd.f32 %v2322_v31, %v938_v32  ;;  %v2187_v31 = vld [vmem:[%s3231_s3 + $0x1b8] sm:$0xff]  ;;  %v2186_v32 = vld [vmem:[%s3231_s3 + $0x1b0] sm:$0xff] }
 0x5c5   : > { %v848_v12 = vpop.f32.mrf.mxu2  ;;  %996 = vmatpush.msrb.mxu3 %v2148_v26 }
 0x5c6   : > { %v849_v13 = vadd.f32 %v848_v12, %v2685_v7 }
 0x5c8   : > { %v851_v14 = vsel %vm475_vm5, %v849_v13, -inf }
 0x5c9   : > { %852 = vmax.xlane.f32.xlu0 %v851_v14 }
 0x5cd   : > { %v968_v16 = vpop.f32.mrf.mxu2 }
 0x5ce   : > { %v969_v17 = vadd.f32 %v2323_v15, %v968_v16 }
 0x5d0   : > { %2154 = vmatpush.xpose.msk.msrb.mxu0 %vm475_vm5, %v969_v17 }
 0x63c   : > { %v853_v18 = vpop.xlane.xlu0 %852 }
 0x63d   : > { %v854_v19 = vsub.f32 %v849_v13, %v853_v18 }
 0x63f   : > { %v855_v20 = vmul.f32 1.442695, %v854_v19 }
 0x641   : > { %2357 = vpow2.f32 %v855_v20  ;;  %v2326_v20 = vld [vmem:[%s3235_s7 + $0x3] ss:$0 sm:$0xff] }
 0x647   : > { %v2358_v21 = vpop.eup %2357 }
 0x648   : > { %v857_v22 = vsel %vm475_vm5, %v2358_v21, 0.0 }
 0x649   : > { %858 = vadd.xlane.f32.xlu1 %v857_v22 }
 0x6bc   : > { %v859_v27 = vpop.xlane.xlu1 %858 }
 0x6bd   : > { %2359 = vrcp.f32 %v859_v27  ;;  %v2328_v27 = vld [vmem:[%s3232_s4 + $0x10] ss:$0 sm:$0xff] }
 0x6c3   : > { %v2360_v28 = vpop.eup %2359 }
 0x6c4   : > { %v861_v29 = vmul.f32 %v2360_v28, %v2358_v21 }
 0x6c6   : > { %2133 = vmatmul.msk.f32.vlgmr.msra.gmra.mxu3 %vm475_vm5, %v861_v29 }
 0x6c7   : > { %1144 = vmatpush.msra.mxu3 %v2162_v4  ;;  %v2212_v4 = vld [vmem:[%s3231_s3 + $0x1c8] sm:$0xff] }
 0x6ce   : > { %2153 = vmatmul.msk.f32.vlgmr.msrb.gmra.mxu3 %vm350_vm0, %v2647_v52 }
 0x749   : > { %v882_v30 = vpop.f32.mrf.mxu3 }
 0x74a   : > { %2135 = vmatmul.msk.f32.vlgmr.msra.gmra.mxu0 %vm475_vm5, %v882_v30 }
 0x751   : > { %v998_v35 = vpop.f32.mrf.mxu3 }
 0x752   : > { %v999_v36 = vadd.f32 %v2324_v33, %v998_v35  ;;  %2155 = vmatmul.msk.f32.vlgmr.msrb.gmra.mxu0 %vm475_vm5, %v939_v34  ;;  %v2185_v33 = vld [vmem:[%s3231_s3 + $0x1a8] sm:$0xff]  ;;  %v2184_v34 = vld [vmem:[%s3231_s3 + $0x1a0] sm:$0xff] }
 0x753   : > { %v2329_v35 = vld [vmem:[%s3232_s4 + $0xc] ss:$0 sm:$0xff] }
 0x754   : > { %1056 = vmatpush.msrb.mxu1 %v999_v36 }
 0x7c7   : > { %v907_v37 = vpop.f32.mrf.mxu0 }
 0x7c8   : > { %v910_v52 = vadd.f32 %v907_v37, %v733_v5  ;;  %v2161_v5 = vld [vmem:[%s3231_s3 + $0x190] sm:$0xff] }
 0x7c9   : > { %1145 = vmatpush.msra.mxu3 %v2161_v5  ;;  %v2211_v5 = vld [vmem:[%s3231_s3 + $0x1c0] sm:$0xff] }
 0x7cb   : > { %1146 = vmatpush.msra.mxu3 %v2160_v9 }
 0x7cd   : > { %1147 = vmatpush.msra.mxu3 %v2159_v10 }
 0x7cf   : > { %v1024_v38 = vpop.f32.mrf.mxu0 }
 0x7d0   : > { %v1025_v39 = vadd.f32 %v1024_v38, %v2685_v7  ;;  %v2157_v7 = vld [vmem:[%s3233_s5 + $0x18] sm:$0xff]  ;;  %v2174_v38 = vld [vmem:[%s3231_s3 + $0x290] sm:$0xff] }
 0x7d1   : > { %1081 = vmatpush.msrb.mxu2 %v2157_v7 }
 0x7d2   : > { %v1027_v40 = vsel %vm475_vm5, %v1025_v39, -inf }
 0x7d3   : > { %1028 = vmax.xlane.f32.xlu2 %v1027_v40  ;;  %v2172_v40 = vld [vmem:[%s3231_s3 + $0x280] sm:$0xff] }
 0x846   : > { %v1029_v41 = vpop.xlane.xlu2 %1028 }
 0x847   : > { %v1030_v42 = vsub.f32 %v1025_v39, %v1029_v41  ;;  %v2173_v39 = vld [vmem:[%s3231_s3 + $0x288] sm:$0xff]  ;;  %v344_v41 = vlaneseq }
 0x849   : > { %v1031_v43 = vmul.f32 1.442695, %v1030_v42  ;;  %v345_v42 = vand.u32 127, %v344_v41 }
 0x84b   : > { %2361 = vpow2.f32 %v1031_v43  ;;  %vm346_vm10 = vcmp.lt.s32.totalorder %v345_v42, 10  ;;  %v2335_v42 = vld [vmem:[%s3232_s4 + $0x12] ss:$0 sm:$0xff] }
 0x84c   : > { %v2927_v43 = vsel %vm346_vm10, 0.0, %v2450_v6 }
 0x851   : > { %v2362_v44 = vpop.eup %2361 }
 0x852   : > { %v1033_v45 = vsel %vm475_vm5, %v2362_v44, 0.0 }
 0x853   : > { %1034 = vadd.xlane.f32.xlu0 %v1033_v45 }
 0x8c6   : > { %v1035_v46 = vpop.xlane.xlu0 %1034 }
 0x8c7   : > { %2363 = vrcp.f32 %v1035_v46 }
 0x8cd   : > { %v2364_v47 = vpop.eup %2363 }
 0x8ce   : > { %v1037_v48 = vmul.f32 %v2364_v47, %v2362_v44 }
 0x8d0   : > { %2156 = vmatmul.msk.f32.vlgmr.msrb.gmra.mxu1 %vm475_vm5, %v1037_v48  ;;  %v2331_v48 = vld [vmem:[%s3232_s4 + $0x14] ss:$0 sm:$0xff] }
 0x94d   : > { %v1058_v49 = vpop.f32.mrf.mxu1 }
 0x94e   : > { %2158 = vmatmul.msk.f32.vlgmr.msrb.gmra.mxu2 %vm475_vm5, %v1058_v49 }
 0x9d1   : > { %v1083_v50 = vpop.f32.mrf.mxu2 }
 0x9d2   : > { %v1086_v51 = vadd.f32 %v1083_v50, %v910_v52  ;;  %v2175_v52 = vld [vmem:[%s3231_s3 + $0x298] sm:$0xff] }
 0x9d3   : > { %1213 = vmatpush.msra.mxu1 %v2175_v52 }
 0x9d4   : > { %v1087_v54 = vadd.f32 %v1086_v51, %v2554_v0  ;;  %v2168_v0 = vld [vmem:[%s3231_s3 + $0x218] sm:$0xff] }
 0x9d5   : > { %1180 = vmatpush.msra.mxu0 %v2168_v0  ;;  %1214 = vmatpush.msra.mxu1 %v2174_v38 }
 0x9d6   : > { %v2833_v55 = vadd.f32 %v2325_v53, %v1087_v54 }
 0x9d7   : > { %1181 = vmatpush.msra.mxu0 %v2167_v62  ;;  %1215 = vmatpush.msra.mxu1 %v2173_v39  ;;  %v2183_v39 = vld [vmem:[%s3233_s5 + $0x20] sm:$0xff] }
 0x9d8   : > { %v1093_v56 = vsel %vm350_vm0, %v2833_v55, 0.0 }
 0x9d9   : > { %1094 = vadd.xlane.f32.xlu1 %v1093_v56  ;;  %1182 = vmatpush.msra.mxu0 %v2166_v63  ;;  %v2214_v63 = vld [vmem:[%s3231_s3 + $0x1d8] sm:$0xff] }
 0x9da   : > { %1216 = vmatpush.msra.mxu1 %v2172_v40 }
 0x9db   : > { %1183 = vmatpush.msra.mxu0 %v2165_v2  ;;  %2177 = vmatmul.msk.f32.vlgmr.msra.gmra.mxu1 %vm350_vm0, %v2853_v1  ;;  %v2213_v2 = vld [vmem:[%s3231_s3 + $0x1d0] sm:$0xff] }
 0x9dc   : > { %2170 = vmatmul.msk.f32.vlgmr.msra.gmra.mxu0 %vm350_vm0, %v2853_v1 }
 0x9e3   : > { %2178 = vmatmul.msk.f32.gmra.mxu1 %vm350_vm0, %v2860_v3 }
 0x9e4   : > { %2171 = vmatmul.msk.f32.gmra.mxu0 %vm350_vm0, %v2860_v3 }
 0xa4c   : > { %v1095_v57 = vpop.xlane.xlu1 %1094 }
 0xa4d   : > { %v1096_v58 = vmul.f32 %v1095_v57, %v2558_v8  ;;  %v2193_v57 = vld [vmem:[%s3231_s3 + $0x238] sm:$0xff] }
 0xa4f   : > { %v1097_v59 = vsub.f32 %v2833_v55, %v1096_v58  ;;  %v2192_v58 = vld [vmem:[%s3231_s3 + $0x230] sm:$0xff] }
 0xa51   : > { %v1098_v60 = vmul.f32 %v1097_v59, %v1097_v59 }
 0xa53   : > { %v1099_v61 = vsel %vm350_vm0, %v1098_v60, 0.0  ;;  %v2190_v60 = vld [vmem:[%s3231_s3 + $0x220] sm:$0xff] }
 0xa54   : > { %1100 = vadd.xlane.f32.xlu2 %v1099_v61 }
 0xa58   : > { %v1218_v47 = vpop.f32.mrf.mxu1 }
 0xa59   : > { %v1185_v26 = vpop.f32.mrf.mxu0  ;;  %v1219_v50 = vadd.f32 %v2331_v48, %v1218_v47 }
 0xa5a   : > { %v1186_v30 = vadd.f32 %v2328_v27, %v1185_v26 }
 0xa60   : > { %v1221_v7 = vpop.f32.mrf.mxu1 }
 0xa61   : > { %v1188_v28 = vpop.f32.mrf.mxu0  ;;  %v1222_v51 = vadd.f32 %v2331_v48, %v1221_v7  ;;  %v2333_v7 = vld [vmem:[%s3232_s4 + $0xe] ss:$0 sm:$0xff] }
 0xa62   : > { %v1189_v29 = vadd.f32 %v2328_v27, %v1188_v28  ;;  %v2219_v27 = vld [vmem:[%s3231_s3 + $0x250] sm:$0xff]  ;;  %v2218_v28 = vld [vmem:[%s3231_s3 + $0x248] sm:$0xff] }
 0xa63   : > { %1282 = vmatpush.msrb.mxu3 %v1222_v51  ;;  %v2208_v51 = vld [vmem:[%s3233_s5 + $0x28] sm:$0xff] }
 0xa64   : > { %2179 = vmatpush.xpose.msk.msra.mxu2 %vm475_vm5, %v1189_v29  ;;  %v2217_v29 = vld [vmem:[%s3231_s3 + $0x240] sm:$0xff] }
 0xa65   : > { %1283 = vmatpush.msrb.mxu3 %v1219_v50 }
 0xa68   : > { %2180 = vmatpush.xpose.msk.msra.mxu2 %vm475_vm5, %v1186_v30 }
 0xa6c   : > { %1312 = vmatpush.msrb.mxu2 %v2187_v31  ;;  %v2334_v31 = vld [vmem:[%s3232_s4 + $0x15] ss:$0 sm:$0xff] }
 0xa6e   : > { %1313 = vmatpush.msrb.mxu2 %v2186_v32 }
 0xa70   : > { %1314 = vmatpush.msrb.mxu2 %v2185_v33 }
 0xa72   : > { %1315 = vmatpush.msrb.mxu2 %v2184_v34 }
 0xac7   : > { %v1101_v11 = vpop.xlane.xlu2 %1100 }
 0xac8   : > { %v1102_v12 = vmul.f32 %v1101_v11, %v2558_v8  ;;  %v2332_v11 = vld [vmem:[%s3232_s4 + $0x11] ss:$0 sm:$0xff] }
 0xaca   : > { %v1103_v13 = vadd.f32 1e-06, %v1102_v12 }
 0xacc   : > { %2365 = vrsqrt.f32 %v1103_v13  ;;  %vm1110_vm8 = vweird.f32 %v1103_v13 }
 0xad2   : > { %v2366_v14 = vpop.eup %2365 }
 0xad3   : > { %v1105_v15 = vmul.f32 %v2366_v14, %v1103_v13  ;;  %vm1111_vm7 = vweird.f32 %v2366_v14 }
 0xad4   : > { %vm1112_vm9 = vmor %vm1110_vm8, %vm1111_vm7 }
 0xad5   : > { %v1106_v16 = vmul.f32 %v2366_v14, %v1105_v15 }
 0xad7   : > { %v1107_v17 = vmul.f32 0.5, %v1106_v16 }
 0xad9   : > { %v1108_v18 = vsub.f32 1.5, %v1107_v17 }
 0xadb   : > { %v1109_v19 = vmul.f32 %v2366_v14, %v1108_v18  ;;  %v2200_v18 = vld [vmem:[%s3231_s3 + $0x2b8] sm:$0xff] }
 0xadc   : > { %1375 = vmatpush.msrb.mxu0 %v2200_v18  ;;  %v2240_v18 = vld [vmem:[%s3231_s3 + $0x1f8] sm:$0xff] }
 0xadd   : > { %v1113_v21 = vsel %vm1112_vm9, %v2366_v14, %v1109_v19  ;;  %v2330_v14 = vld [vmem:[%s3232_s4 + $0xd] ss:$0 sm:$0xff]  ;;  %v2199_v19 = vld [vmem:[%s3231_s3 + $0x2b0] sm:$0xff] }
 0xade   : > { %v1114_v22 = vmul.f32 %v1113_v21, %v1097_v59  ;;  %v2191_v59 = vld [vmem:[%s3231_s3 + $0x228] sm:$0xff]  ;;  %1376 = vmatpush.msrb.mxu0 %v2199_v19  ;;  %v2197_v21 = vld [vmem:[%s3231_s3 + $0x2a0] sm:$0xff]  ;;  %v2239_v19 = vld [vmem:[%s3231_s3 + $0x1f0] sm:$0xff] }
 0xae0   : > { %v1116_v24 = vmul.f32 %v2326_v20, %v1114_v22  ;;  %v2198_v20 = vld [vmem:[%s3231_s3 + $0x2a8] sm:$0xff]  ;;  %v2220_v22 = vld [vmem:[%s3231_s3 + $0x258] sm:$0xff] }
 0xae1   : > { %1377 = vmatpush.msrb.mxu0 %v2198_v20  ;;  %v2238_v20 = vld [vmem:[%s3231_s3 + $0x1e8] sm:$0xff] }
 0xae2   : > { %v2883_v25 = vadd.f32 %v2327_v23, %v1116_v24 }
 0xae3   : > { %1378 = vmatpush.msrb.mxu0 %v2197_v21  ;;  %v2237_v21 = vld [vmem:[%s3231_s3 + $0x1e0] sm:$0xff] }
 0xae4   : > { %2164 = vmatmul.msk.f32.vlgmr.msra.gmra.mxu3 %vm350_vm0, %v2883_v25  ;;  %2202 = vmatmul.msk.f32.vlgmr.msrb.gmra.mxu0 %vm350_vm0, %v2853_v1 }
 0xae5   : > { %1342 = vmatpush.msra.mxu3 %v2193_v57  ;;  %1549 = vmatpush.msra.mxu0 %v2220_v22 }
 0xae7   : > { %1343 = vmatpush.msra.mxu3 %v2192_v58  ;;  %1550 = vmatpush.msra.mxu0 %v2219_v27 }
 0xae9   : > { %1344 = vmatpush.msra.mxu3 %v2191_v59  ;;  %1551 = vmatpush.msra.mxu0 %v2218_v28  ;;  %v2337_v28 = vld [vmem:[%s3232_s4 + $0x13] ss:$0 sm:$0xff] }
 0xaeb   : > { %1345 = vmatpush.msra.mxu3 %v2190_v60  ;;  %1552 = vmatpush.msra.mxu0 %v2217_v29 }
 0xaec   : > { %2203 = vmatmul.msk.f32.gmra.mxu0 %vm350_vm0, %v2860_v3 }
 0xaf4   : > { %2222 = vmatmul.msk.f32.vlgmr.msra.gmra.mxu0 %vm350_vm0, %v2853_v1 }
 0xafc   : > { %2223 = vmatmul.msk.f32.gmra.mxu0 %vm350_vm0, %v2860_v3 }
 0xb61   : > { %v1380_v30 = vpop.f32.mrf.mxu0 }
 0xb62   : > { %v1381_v33 = vadd.f32 %v2334_v31, %v1380_v30 }
 0xb67   : > { %v1149_v36 = vpop.f32.mrf.mxu3 }
 0xb68   : > { %v1150_v37 = vadd.f32 %v2329_v35, %v1149_v36 }
 0xb69   : > { %v1383_v32 = vpop.f32.mrf.mxu0 }
 0xb6a   : > { %2181 = vmatmul.msk.f32.vlgmr.msra.gmra.mxu2 %vm475_vm5, %v1150_v37  ;;  %v1384_v34 = vadd.f32 %v2334_v31, %v1383_v32 }
 0xb6c   : > { %1443 = vmatpush.msra.mxu2 %v1384_v34 }
 0xb6e   : > { %1444 = vmatpush.msra.mxu2 %v1381_v33 }
 0xb71   : > { %v1554_v40 = vpop.f32.mrf.mxu0 }
 0xb72   : > { %2189 = vmatmul.msk.f32.vlgmr.msrb.gmra.mxu2 %vm350_vm0, %v2883_v25  ;;  %v1555_v48 = vadd.f32 %v2335_v42, %v1554_v40 }
 0xb73   : > { %1492 = vmatpush.msrb.mxu2 %v2183_v39 }
 0xbed   : > { %v1250_v44 = vpop.f32.mrf.mxu2 }
 0xbee   : > { %v1251_v45 = vadd.f32 %v1250_v44, %v2927_v43  ;;  %v1557_v44 = vpop.f32.mrf.mxu0 }
 0xbf0   : > { %v1254_v46 = vsel %vm1253_vm11, %v1251_v45, -inf }
 0xbf1   : > { %1255 = vmax.xlane.f32.xlu0 %v1254_v46  ;;  %v1558_v46 = vadd.f32 %v2335_v42, %v1557_v44  ;;  %v2339_v44 = vld [vmem:[%s3232_s4 + $0x17] ss:$0 sm:$0xff] }
 0xbf5   : > { %v1317_v15 = vpop.f32.mrf.mxu2 }
 0xbf6   : > { %v1318_v17 = vadd.f32 %v2330_v14, %v1317_v15 }
 0xc64   : > { %v1256_v49 = vpop.xlane.xlu0 %1255 }
 0xc65   : > { %v1257_v53 = vsub.f32 %v1251_v45, %v1256_v49 }
 0xc67   : > { %v1258_v6 = vmul.f32 1.442695, %v1257_v53  ;;  %v2227_v53 = vld [vmem:[%s3231_s3 + $0x2d8] sm:$0xff] }
 0xc69   : > { %2367 = vpow2.f32 %v1258_v6  ;;  %v2226_v6 = vld [vmem:[%s3231_s3 + $0x2d0] sm:$0xff] }
 0xc6f   : > { %v2368_v54 = vpop.eup %2367 }
 0xc70   : > { %v1260_v56 = vsel %vm1253_vm11, %v2368_v54, 0.0 }
 0xc71   : > { %1261 = vadd.xlane.f32.xlu1 %v1260_v56 }
 0xce4   : > { %v1262_v61 = vpop.xlane.xlu1 %1261 }
 0xce5   : > { %2369 = vrcp.f32 %v1262_v61  ;;  %v2224_v61 = vld [vmem:[%s3231_s3 + $0x2c0] sm:$0xff] }
 0xceb   : > { %v2370_v0 = vpop.eup %2369 }
 0xcec   : > { %v1264_v62 = vmul.f32 %v2370_v0, %v2368_v54  ;;  %v2225_v54 = vld [vmem:[%s3231_s3 + $0x2c8] sm:$0xff] }
 0xcee   : > { %2182 = vmatmul.msk.f32.vlgmr.msrb.gmra.mxu3 %vm1253_vm11, %v1264_v62 }
 0xcef   : > { %1519 = vmatpush.msrb.mxu3 %v2214_v63 }
 0xcf1   : > { %1520 = vmatpush.msrb.mxu3 %v2213_v2 }
 0xcf3   : > { %1521 = vmatpush.msrb.mxu3 %v2212_v4 }
 0xcf5   : > { %1522 = vmatpush.msrb.mxu3 %v2211_v5  ;;  %v2246_v5 = vld [vmem:[%s3231_s3 + $0x278] sm:$0xff] }
 0xcf6   : > { %2195 = vmatmul.msk.f32.vlgmr.msra.gmra.mxu3 %vm350_vm0, %v2853_v1  ;;  %1734 = vmatpush.msrb.mxu0 %v2246_v5 }
 0xcfe   : > { %2196 = vmatmul.msk.f32.gmra.mxu3 %vm350_vm0, %v2860_v3 }
 0xd06   : > { %2216 = vmatmul.msk.f32.vlgmr.msrb.gmra.mxu3 %vm350_vm0, %v2883_v25 }
 0xd71   : > { %v2966_v9 = vpop.f32.mrf.mxu3 }
 0xd79   : > { %v1347_v10 = vpop.f32.mrf.mxu3 }
 0xd7a   : > { %v1348_v16 = vadd.f32 %v2332_v11, %v1347_v10 }
 0xd81   : > { %v1350_v12 = vpop.f32.mrf.mxu3 }
 0xd82   : > { %v1351_v13 = vadd.f32 %v2332_v11, %v1350_v12  ;;  %v2336_v12 = vld [vmem:[%s3232_s4 + $0x16] ss:$0 sm:$0xff] }
 0xd84   : > { %2204 = vmatpush.xpose.msk.msrb.mxu1 %vm475_vm5, %v1351_v13  ;;  %v2244_v13 = vld [vmem:[%s3231_s3 + $0x268] sm:$0xff] }
 0xd88   : > { %2205 = vmatpush.xpose.msk.msrb.mxu1 %vm475_vm5, %v1348_v16 }
 0xd89   : > { %v1524_v49 = vpop.f32.mrf.mxu3 }
 0xd8a   : > { %v1525_v50 = vadd.f32 %v2333_v7, %v1524_v49 }
 0xd8b   : > { %2206 = vmatmul.msk.f32.vlgmr.msrb.gmra.mxu1 %vm475_vm5, %v1318_v17  ;;  %v2243_v17 = vld [vmem:[%s3231_s3 + $0x260] sm:$0xff] }
 0xd8c   : > { %1469 = vmatpush.msra.mxu1 %v2208_v51 }
 0xd8e   : > { %1582 = vmatpush.msrb.mxu1 %v2227_v53  ;;  %v2261_v53 = vld [vmem:[%s3233_s5 + $0x38] sm:$0xff] }
 0xd90   : > { %1583 = vmatpush.msrb.mxu1 %v2226_v6 }
 0xd92   : > { %1584 = vmatpush.msrb.mxu1 %v2225_v54 }
 0xd94   : > { %1585 = vmatpush.msrb.mxu1 %v2224_v61 }
 0xe08   : > { %v1412_v23 = vpop.f32.mrf.mxu1 }
 0xe09   : > { %v1413_v24 = vadd.f32 %v1412_v23, %v2927_v43 }
 0xe0b   : > { %v1415_v26 = vsel %vm1253_vm11, %v1413_v24, -inf }
 0xe0c   : > { %1416 = vmax.xlane.f32.xlu2 %v1415_v26  ;;  %v2235_v26 = vld [vmem:[%s3233_s5 + $0x30] sm:$0xff] }
 0xe7f   : > { %v1417_v35 = vpop.xlane.xlu2 %1416 }
 0xe80   : > { %v1418_v36 = vsub.f32 %v1413_v24, %v1417_v35  ;;  %v2253_v35 = vld [vmem:[%s3231_s3 + $0x2f8] sm:$0xff] }
 0xe82   : > { %v1419_v37 = vmul.f32 1.442695, %v1418_v36  ;;  %v2252_v36 = vld [vmem:[%s3231_s3 + $0x2f0] sm:$0xff] }
 0xe84   : > { %2371 = vpow2.f32 %v1419_v37  ;;  %v2251_v37 = vld [vmem:[%s3231_s3 + $0x2e8] sm:$0xff] }
 0xe8a   : > { %v2372_v52 = vpop.eup %2371 }
 0xe8b   : > { %v1421_v38 = vsel %vm1253_vm11, %v2372_v52, 0.0 }
 0xe8c   : > { %1422 = vadd.xlane.f32.xlu0 %v1421_v38 }
 0xeff   : > { %v1423_v41 = vpop.xlane.xlu0 %1422 }
 0xf00   : > { %2373 = vrcp.f32 %v1423_v41 }
 0xf06   : > { %v2374_v45 = vpop.eup %2373 }
 0xf07   : > { %v1425_v47 = vmul.f32 %v2374_v45, %v2372_v52  ;;  %v2250_v52 = vld [vmem:[%s3231_s3 + $0x2e0] sm:$0xff] }
 0xf09   : > { %2207 = vmatmul.msk.f32.vlgmr.msra.gmra.mxu2 %vm1253_vm11, %v1425_v47 }
 0xf0a   : > { %2231 = vmatpush.xpose.msk.msra.mxu2 %vm475_vm5, %v1558_v46 }
 0xf0e   : > { %2232 = vmatpush.xpose.msk.msra.mxu2 %vm475_vm5, %v1555_v48 }
 0xf11   : > { %2210 = vmatmul.msk.f32.vlgmr.msrb.gmra.mxu2 %vm475_vm5, %v2966_v9  ;;  %v2245_v9 = vld [vmem:[%s3231_s3 + $0x270] sm:$0xff] }
 0xf12   : > { %1735 = vmatpush.msrb.mxu0 %v2245_v9  ;;  %1676 = vmatpush.msrb.mxu2 %v2235_v26  ;;  %v1902_v9 = vld [vmem:[%s3234_s6 + $0x18] sm:$0xff]  ;;  %v2341_v26 = vld [vmem:[%s3235_s7 + $0x6] ss:$0 sm:$0xff] }
 0xf14   : > { %1736 = vmatpush.msrb.mxu0 %v2244_v13  ;;  %v1909_v13 = vld [vmem:[%s3234_s6 + $0x50] sm:$0xff] }
 0xf16   : > { %1737 = vmatpush.msrb.mxu0 %v2243_v17  ;;  %v1907_v17 = vld [vmem:[%s3234_s6 + $0x40] sm:$0xff] }
 0xf17   : > { %2248 = vmatmul.msk.f32.vlgmr.msrb.gmra.mxu0 %vm350_vm0, %v2853_v1 }
 0xf19   : > { %2233 = vmatmul.msk.f32.vlgmr.msra.gmra.mxu2 %vm475_vm5, %v1525_v50 }
 0xf1f   : > { %2249 = vmatmul.msk.f32.gmra.mxu0 %vm350_vm0, %v2860_v3 }
 0xf8c   : > { %v1446_v56 = vpop.f32.mrf.mxu2 }
 0xf8d   : > { %2209 = vmatmul.msk.f32.vlgmr.msra.gmra.mxu1 %vm475_vm5, %v1446_v56 }
 0xf8e   : > { %1767 = vmatpush.msra.mxu1 %v2253_v35 }
 0xf90   : > { %1768 = vmatpush.msra.mxu1 %v2252_v36 }
 0xf92   : > { %1769 = vmatpush.msra.mxu1 %v2251_v37 }
 0xf94   : > { %v3043_v57 = vpop.f32.mrf.mxu2  ;;  %v1739_v27 = vpop.f32.mrf.mxu0  ;;  %1770 = vmatpush.msra.mxu1 %v2250_v52  ;;  %v2344_v52 = vld [vmem:[%s3235_s7 + $0x8] ss:$0 sm:$0xff] }
 0xf95   : > { %2229 = vmatmul.msk.f32.vlgmr.msrb.gmra.mxu1 %vm350_vm0, %v2853_v1  ;;  %v1740_v31 = vadd.f32 %v2337_v28, %v1739_v27 }
 0xf9c   : > { %v1619_v58 = vpop.f32.mrf.mxu2  ;;  %v1742_v29 = vpop.f32.mrf.mxu0 }
 0xf9d   : > { %v1620_v59 = vadd.f32 %v1619_v58, %v2927_v43  ;;  %2230 = vmatmul.msk.f32.gmra.mxu1 %vm350_vm0, %v2860_v3  ;;  %v1743_v30 = vadd.f32 %v2337_v28, %v1742_v29  ;;  %v2342_v29 = vld [vmem:[%s3235_s7 + $0x7] ss:$0 sm:$0xff] }
 0xf9f   : > { %v1622_v60 = vsel %vm1253_vm11, %v1620_v59, -inf  ;;  %2257 = vmatpush.xpose.msk.msra.mxu2 %vm475_vm5, %v1743_v30 }
 0xfa0   : > { %1623 = vmax.xlane.f32.xlu1 %v1622_v60  ;;  %v2340_v60 = vld [vmem:[%s3235_s7 + $0x5] ss:$0 sm:$0xff] }
 0xfa3   : > { %2258 = vmatpush.xpose.msk.msra.mxu2 %vm475_vm5, %v1740_v31 }
 0xfa5   : > { %2255 = vmatmul.msk.f32.vlgmr.msra.gmra.mxu1 %vm350_vm0, %v2853_v1 }
 0xfad   : > { %2256 = vmatmul.msk.f32.gmra.mxu1 %vm350_vm0, %v2860_v3 }
0x100a   : > { %v3061_v10 = vpop.f32.mrf.mxu1 }
0x100b   : > { %v1495_v54 = vadd.f32 %v3043_v57, %v3061_v10  ;;  %v1900_v10 = vld [vmem:[%s3234_s6 + $0x8] sm:$0xff] }
0x1012   : > { %v1587_v11 = vpop.f32.mrf.mxu1 }
0x1013   : > { %v1624_v0 = vpop.xlane.xlu1 %1623  ;;  %v1588_v15 = vadd.f32 %v2336_v12, %v1587_v11  ;;  %v1899_v11 = vld [vmem:[%s3234_s6] sm:$0xff] }
0x1014   : > { %v1625_v62 = vsub.f32 %v1620_v59, %v1624_v0 }
0x1016   : > { %v1626_v63 = vmul.f32 1.442695, %v1625_v62 }
0x1018   : > { %2375 = vpow2.f32 %v1626_v63 }
0x101a   : > { %v1590_v14 = vpop.f32.mrf.mxu1 }
0x101b   : > { %v1591_v16 = vadd.f32 %v2336_v12, %v1590_v14  ;;  %v1910_v12 = vld [vmem:[%s3234_s6 + $0x58] sm:$0xff]  ;;  %v1908_v14 = vld [vmem:[%s3234_s6 + $0x48] sm:$0xff] }
0x101c   : > { %1951 = vmatpush.msra.mxu0 %v1910_v12 }
0x101d   : > { %1650 = vmatpush.msra.mxu3 %v1591_v16 }
0x101e   : > { %v2376_v2 = vpop.eup %2375  ;;  %1952 = vmatpush.msra.mxu0 %v1909_v13 }
0x101f   : > { %v1628_v4 = vsel %vm1253_vm11, %v2376_v2, 0.0  ;;  %1651 = vmatpush.msra.mxu3 %v1588_v15 }
0x1020   : > { %1629 = vadd.xlane.f32.xlu2 %v1628_v4  ;;  %1953 = vmatpush.msra.mxu0 %v1908_v14 }
0x1021   : > { %1704 = vmatpush.msrb.mxu3 %v2240_v18 }
0x1022   : > { %v1772_v42 = vpop.f32.mrf.mxu1  ;;  %1954 = vmatpush.msra.mxu0 %v1907_v17 }
0x1023   : > { %1705 = vmatpush.msrb.mxu3 %v2239_v19  ;;  %v1773_v46 = vadd.f32 %v2339_v44, %v1772_v42  ;;  %v1906_v19 = vld [vmem:[%s3234_s6 + $0x38] sm:$0xff] }
0x1024   : > { %1955 = vmatpush.msra.mxu0 %v1906_v19 }
0x1025   : > { %1706 = vmatpush.msrb.mxu3 %v2238_v20 }
0x1027   : > { %1707 = vmatpush.msrb.mxu3 %v2237_v21 }
0x102a   : > { %v1775_v45 = vpop.f32.mrf.mxu1 }
0x102b   : > { %v1776_v47 = vadd.f32 %v2339_v44, %v1775_v45 }
0x1093   : > { %v1630_v22 = vpop.xlane.xlu2 %1629 }
0x1094   : > { %2377 = vrcp.f32 %v1630_v22 }
0x109a   : > { %v2378_v23 = vpop.eup %2377 }
0x109b   : > { %v1632_v24 = vmul.f32 %v2378_v23, %v2376_v2 }
0x109d   : > { %2234 = vmatmul.msk.f32.vlgmr.msra.gmra.mxu3 %vm1253_vm11, %v1632_v24 }
0x109e   : > { %1835 = vmatpush.msra.mxu3 %v1776_v47 }
0x10a0   : > { %1836 = vmatpush.msra.mxu3 %v1773_v46 }
0x10a5   : > { %2242 = vmatmul.msk.f32.vlgmr.msrb.gmra.mxu3 %vm350_vm0, %v2883_v25  ;;  %v2338_v25 = vld [vmem:[%s3232_s4 + $0xf] ss:$0 sm:$0xff] }
0x10a6   : > { %1928 = vmatpush.msrb.mxu3 %v1902_v9 }
0x1120   : > { %v1653_v32 = vpop.f32.mrf.mxu3 }
0x1121   : > { %2236 = vmatmul.msk.f32.vlgmr.msrb.gmra.mxu2 %vm475_vm5, %v1653_v32  ;;  %v1905_v32 = vld [vmem:[%s3234_s6 + $0x30] sm:$0xff] }
0x1122   : > { %1861 = vmatpush.msrb.mxu2 %v2261_v53  ;;  %1956 = vmatpush.msra.mxu0 %v1905_v32 }
0x1128   : > { %v1709_v33 = vpop.f32.mrf.mxu3 }
0x1129   : > { %v1710_v34 = vadd.f32 %v2338_v25, %v1709_v33  ;;  %v1904_v25 = vld [vmem:[%s3234_s6 + $0x28] sm:$0xff]  ;;  %v1903_v33 = vld [vmem:[%s3234_s6 + $0x20] sm:$0xff] }
0x112a   : > { %1957 = vmatpush.msra.mxu0 %v1904_v25 }
0x112b   : > { %2259 = vmatmul.msk.f32.vlgmr.msra.gmra.mxu2 %vm475_vm5, %v1710_v34  ;;  %v2343_v34 = vld [vmem:[%s3235_s7 + $0x9] ss:$0 sm:$0xff] }
0x112c   : > { %1958 = vmatpush.msra.mxu0 %v1903_v33 }
0x11a4   : > { %v1678_v38 = vpop.f32.mrf.mxu2 }
0x11a5   : > { %v1681_v56 = vadd.f32 %v1678_v38, %v1495_v54 }
0x11ae   : > { %v1804_v39 = vpop.f32.mrf.mxu2 }
0x11af   : > { %v1805_v40 = vadd.f32 %v1804_v39, %v2927_v43 }
0x11b1   : > { %v1807_v41 = vsel %vm1253_vm11, %v1805_v40, -inf }
0x11b2   : > { %1808 = vmax.xlane.f32.xlu0 %v1807_v41 }
0x1225   : > { %v1809_v1 = vpop.xlane.xlu0 %1808 }
0x1226   : > { %v1810_v48 = vsub.f32 %v1805_v40, %v1809_v1 }
0x1228   : > { %v1811_v3 = vmul.f32 1.442695, %v1810_v48 }
0x122a   : > { %2379 = vpow2.f32 %v1811_v3 }
0x1230   : > { %v2380_v7 = vpop.eup %2379 }
0x1231   : > { %v1813_v43 = vsel %vm1253_vm11, %v2380_v7, 0.0 }
0x1232   : > { %1814 = vadd.xlane.f32.xlu1 %v1813_v43 }
0x12a5   : > { %v1815_v49 = vpop.xlane.xlu1 %1814 }
0x12a6   : > { %2381 = vrcp.f32 %v1815_v49 }
0x12ac   : > { %v2382_v50 = vpop.eup %2381 }
0x12ad   : > { %v1817_v51 = vmul.f32 %v2382_v50, %v2380_v7 }
0x12af   : > { %2260 = vmatmul.msk.f32.vlgmr.msra.gmra.mxu3 %vm1253_vm11, %v1817_v51 }
0x1332   : > { %v1838_v6 = vpop.f32.mrf.mxu3 }
0x1333   : > { %2262 = vmatmul.msk.f32.vlgmr.msrb.gmra.mxu2 %vm475_vm5, %v1838_v6 }
0x13b6   : > { %v1863_v58 = vpop.f32.mrf.mxu2 }
0x13b7   : > { %v1866_v59 = vadd.f32 %v1863_v58, %v1681_v56 }
0x13b9   : > { %v1867_v61 = vadd.f32 %v1866_v59, %v2833_v55  ;;  %v1901_v55 = vld [vmem:[%s3234_s6 + $0x10] sm:$0xff] }
0x13ba   : > { %1929 = vmatpush.msrb.mxu3 %v1901_v55 }
0x13bb   : > { %v3137_v0 = vadd.f32 %v2340_v60, %v1867_v61 }
0x13bc   : > { %1930 = vmatpush.msrb.mxu3 %v1900_v10 }
0x13bd   : > { %v1873_v62 = vsel %vm350_vm0, %v3137_v0, 0.0 }
0x13be   : > { %1874 = vadd.xlane.f32.xlu2 %v1873_v62  ;;  %1931 = vmatpush.msrb.mxu3 %v1899_v11 }
0x1431   : > { %v1875_v63 = vpop.xlane.xlu2 %1874 }
0x1432   : > { %v1876_v2 = vmul.f32 %v1875_v63, %v2558_v8 }
0x1434   : > { %v1877_v57 = vsub.f32 %v3137_v0, %v1876_v2 }
0x1436   : > { %v1878_v4 = vmul.f32 %v1877_v57, %v1877_v57 }
0x1438   : > { %v1879_v5 = vsel %vm350_vm0, %v1878_v4, 0.0 }
0x1439   : > { %1880 = vadd.xlane.f32.xlu0 %v1879_v5 }
0x14ac   : > { %v1881_v15 = vpop.xlane.xlu0 %1880 }
0x14ad   : > { %v1882_v16 = vmul.f32 %v1881_v15, %v2558_v8 }
0x14af   : > { %v1883_v18 = vadd.f32 1e-06, %v1882_v16 }
0x14b1   : > { %2383 = vrsqrt.f32 %v1883_v18  ;;  %vm1890_vm13 = vweird.f32 %v1883_v18 }
0x14b7   : > { %v2384_v20 = vpop.eup %2383 }
0x14b8   : > { %v1885_v21 = vmul.f32 %v2384_v20, %v1883_v18  ;;  %vm1891_vm12 = vweird.f32 %v2384_v20 }
0x14b9   : > { %vm1892_vm14 = vmor %vm1890_vm13, %vm1891_vm12 }
0x14ba   : > { %v1886_v22 = vmul.f32 %v2384_v20, %v1885_v21 }
0x14bc   : > { %v1887_v23 = vmul.f32 0.5, %v1886_v22 }
0x14be   : > { %v1888_v24 = vsub.f32 1.5, %v1887_v23 }
0x14c0   : > { %v1889_v8 = vmul.f32 %v2384_v20, %v1888_v24 }
0x14c2   : > { %v1893_v27 = vsel %vm1892_vm14, %v2384_v20, %v1889_v8 }
0x14c3   : > { %v1894_v28 = vmul.f32 %v1893_v27, %v1877_v57 }
0x14c5   : > { %v1896_v30 = vmul.f32 %v2341_v26, %v1894_v28 }
0x14c7   : > { %v1898_v31 = vadd.f32 %v2342_v29, %v1896_v30 }
0x14c9   : > { %2263 = vmatmul.msk.f32.vlgmr.msrb.gmra.mxu3 %vm350_vm0, %v1898_v31 }
0x154c   : > { %v1933_v35 = vpop.f32.mrf.mxu3 }
0x154d   : > { %v1934_v36 = vadd.f32 %v2343_v34, %v1933_v35 }
0x154f   : > { %v1936_v37 = vmax.f32 %v1934_v36, 0.0 }
0x1551   : > { %2264 = vmatmul.msk.f32.vlgmr.msra.gmra.mxu0 %vm1939_vm15, %v1936_v37 }
0x15ce   : > { %v1960_v38 = vpop.f32.mrf.mxu0 }
0x15cf   : > { %v1961_v39 = vadd.f32 %v2344_v52, %v1960_v38 }
0x15d1   : > { %v1963_v40 = vadd.f32 %v1961_v39, %v3137_v0 }
0x15d3   : > { %1964 = vst.msk [vmem:[%s324_s10] sm:$0xff] %vm350_vm0, %v1963_v40 }
0x15d4   : > { %2412 = shalt.err (!%p2409_p3)
}
0x15d5   : > { %2270 = dma.vmem_to_hbm [thread:$0]  (%p2534_p5), %s1979_s12, 128, %s1981_s13, %s1966_s9  }
0x15d6 PF: > { %p2276_p4 = scmp.ge.s32.totalorder %s2447_s30, 2  ;;  %s1992_s20 = sand.u32 1, %s2435_s27  }
0x15d7   : > { %s1993_s26 = scalar_lea.sflag [#allocation3], %s1992_s20 }
0x15d8   : > { %p2273_p7 = pnand %p2276_p4, %p2538_p6 }
0x15da   : > { %p2274_p8 = pneg %p2273_p7 }
0x15dc   : > { %2430 = dma.done.wait (%p2274_p8), %s1993_s26, 128  }
0x15dd   : > { %2432 = vsyncadd (%p2274_p8), %s1993_s26, 4294967168  ;;  %p18_p9 = scmp.ge.s32.totalorder %s2521_s11, 4   ;;  %s3239_s27 = smov %s2439_s28 }
0x15de   : > { %s3240_s28 = smov %s2443_s29  ;;  %s3241_s29 = smov %s2532_s14 }
0x15df   : > { %s3242_s30 = smov %s2521_s11  ;;  %20 = sbr.rel (!%p18_p9) target bundleno = 3 (0x3), region = 146 }
0x15e4   :  { %1999 = vsyncpa [#allocation3], 1 }
0x15e5   :  { %2001 = vsyncpa [#allocation3 + $0x1], 1 }

</bundles_post_ra>
